<compile_context>
chip_gen: v5e
topology: v5e:2x2
jax: 0.10.0
libtpu: 0.0.40
codegen_flags: <defaults>
</compile_context>

<pallas_src>
import functools

import jax
import jax.numpy as jnp
from jax.experimental import pallas as pl
from jax.experimental.pallas import tpu as pltpu

LANE = 128


def _round_up(x, m):
    return ((x + m - 1) // m) * m


def _actor_kernel(s_ref, w1_ref, b1_ref, w2_ref, b2_ref, w3_ref, b3_ref, a_ref):
    s = s_ref[...].astype(jnp.bfloat16)

    h = jnp.dot(s, w1_ref[...], preferred_element_type=jnp.float32) + b1_ref[...]
    h = jnp.maximum(h, 0.0).astype(jnp.bfloat16)

    z = jnp.dot(h, w2_ref[...], preferred_element_type=jnp.float32) + b2_ref[...]
    z = jnp.maximum(z, 0.0).astype(jnp.bfloat16)

    o = jnp.dot(z, w3_ref[...], preferred_element_type=jnp.float32) + b3_ref[...]
    a_ref[...] = jnp.tanh(o).astype(a_ref.dtype)


def _pick_batch_block(B, block_b):
    """Adaptive batch tile: minimise pad waste; >=2 programs when B > 256."""
    if B <= 256:
        return B                                 # single program; block == full batch dim
    n_tiles = max(2, -(-B // block_b))           # >=2 -> both v7x TensorCores busy
    bb = _round_up(-(-B // n_tiles), LANE)       # round_up(cdiv(B, n_tiles), 128)
    return min(bb, block_b)


@functools.partial(jax.jit, static_argnames=("action_dim", "block_b"))
def actor_forward(s, params, *, action_dim, block_b=1024):
    """s: (B, state_dim) f32 -> actions (B, action_dim) f32."""
    B, state_dim = s.shape
    h1p = params["w1"].shape[1]       # padded hidden 1 (multiple of 128)
    h2p = params["w2"].shape[1]       # padded hidden 2 (multiple of 128)
    ap = params["w3"].shape[1]        # padded action dim (multiple of 128)

    s = s.astype(jnp.float32)
    bb = _pick_batch_block(B, block_b)
    b_pad = _round_up(B, bb)
    if b_pad != B:
        s = jnp.pad(s, ((0, b_pad - B), (0, 0)))
    grid = (b_pad // bb,)

    batch_map = lambda i: (i, 0)      # activations / outputs walk the batch axis
    resident = lambda i: (0, 0)       # weights / biases: same block every step

    out = pl.pallas_call(
        _actor_kernel,
        out_shape=jax.ShapeDtypeStruct((b_pad, ap), jnp.float32),
        grid=grid,
        in_specs=[
            pl.BlockSpec((bb, state_dim), batch_map),
            pl.BlockSpec((state_dim, h1p), resident),
            pl.BlockSpec((1, h1p), resident),
            pl.BlockSpec((h1p, h2p), resident),
            pl.BlockSpec((1, h2p), resident),
            pl.BlockSpec((h2p, ap), resident),
            pl.BlockSpec((1, ap), resident),
        ],
        out_specs=pl.BlockSpec((bb, ap), batch_map),
        compiler_params=pltpu.CompilerParams(
            dimension_semantics=("parallel",),
        ),
    )(
        s,
        params["w1"], params["b1"],
        params["w2"], params["b2"],
        params["w3"], params["b3"],
    )
    return out[:B, :action_dim]


def init_actor_params(key, state_dim, action_dim, h1=800, h2=600):
    """PyTorch nn.Linear-style init (U(-1/sqrt(fan_in), 1/sqrt(fan_in))), stored
    in a kernel-friendly layout: weights (in, out) bf16, biases (1, out) f32,
    with hidden/output feature dims zero-padded to multiples of 128 so the
    kernel's matmuls and stores are lane-dense.  Zero padding does not change
    the logical result (relu(0)=0, tanh(0)=0, padded columns are sliced off)."""
    h1p = _round_up(h1, LANE)
    h2p = _round_up(h2, LANE)
    ap = _round_up(action_dim, LANE)

    def linear(k, fan_in, fan_out, in_pad, out_pad):
        kw, kb = jax.random.split(k)
        bound = 1.0 / (fan_in ** 0.5)
        w = jax.random.uniform(kw, (fan_in, fan_out), jnp.float32, -bound, bound)
        b = jax.random.uniform(kb, (1, fan_out), jnp.float32, -bound, bound)
        w = jnp.pad(w, ((0, in_pad - fan_in), (0, out_pad - fan_out)))
        b = jnp.pad(b, ((0, 0), (0, out_pad - fan_out)))
        return w.astype(jnp.bfloat16), b

    k1, k2, k3 = jax.random.split(key, 3)
    w1, b1 = linear(k1, state_dim, h1, state_dim, h1p)   # K=state_dim left unpadded
    w2, b2 = linear(k2, h1, h2, h1p, h2p)
    w3, b3 = linear(k3, h2, action_dim, h2p, ap)
    return {"w1": w1, "b1": b1, "w2": w2, "b2": b2, "w3": w3, "b3": b3}


def actor_reference(s, p, action_dim):
    """Pure-JAX f32 reference of the PyTorch Actor forward (same stored weights).
    The padding is all zeros, so padded math == logical math after slicing."""
    w1 = p["w1"].astype(jnp.float32)
    w2 = p["w2"].astype(jnp.float32)
    w3 = p["w3"].astype(jnp.float32)
    h = jax.nn.relu(s @ w1 + p["b1"])
    z = jax.nn.relu(h @ w2 + p["b2"])
    return jnp.tanh(z @ w3 + p["b3"])[:, :action_dim]


if __name__ == "__main__":
    B, STATE_DIM, ACTION_DIM = 2, 16, 4

    key = jax.random.PRNGKey(0)
    k_s, k_s2, k_p = jax.random.split(key, 3)
    s = jax.random.normal(k_s, (B, STATE_DIM), jnp.float32)
    params = init_actor_params(k_p, STATE_DIM, ACTION_DIM)

    # Small-batch case (single grid step, block == full batch).
    a = actor_forward(s, params, action_dim=ACTION_DIM)
    jax.block_until_ready(a)
    a_ref = actor_reference(s, params, ACTION_DIM)
    assert a.shape == (B, ACTION_DIM)
    assert jnp.allclose(a, a_ref, atol=2e-2, rtol=2e-2)

    # Larger batch exercising the adaptive tile + padding path (3 x 384 tiles).
    B2 = 1040
    s2 = jax.random.normal(k_s2, (B2, STATE_DIM), jnp.float32)
    a2 = actor_forward(s2, params, action_dim=ACTION_DIM, block_b=512)
    jax.block_until_ready(a2)
    a2_ref = actor_reference(s2, params, ACTION_DIM)
    assert a2.shape == (B2, ACTION_DIM)
    assert jnp.allclose(a2, a2_ref, atol=2e-2, rtol=2e-2)

    print("KERNEL_OK")
</pallas_src>

<mosaic_0001>
module attributes {stable_mosaic.version = 11 : i64} {
  func.func @_actor_kernel(%arg0: i32, %arg1: memref<2x16xf32, #tpu.memory_space<vmem>>, %arg2: memref<16x896xbf16, #tpu.memory_space<vmem>>, %arg3: memref<1x896xf32, #tpu.memory_space<vmem>>, %arg4: memref<896x640xbf16, #tpu.memory_space<vmem>>, %arg5: memref<1x640xf32, #tpu.memory_space<vmem>>, %arg6: memref<640x128xbf16, #tpu.memory_space<vmem>>, %arg7: memref<1x128xf32, #tpu.memory_space<vmem>>, %arg8: memref<2x128xf32, #tpu.memory_space<vmem>>) attributes {dimension_semantics = [#tpu.dimension_semantics<parallel>], iteration_bounds = array<i64: 1>, scalar_prefetch = 0 : i64, scratch_operands = 0 : i64, tpu.core_type = #tpu.core_type<tc>, window_params = [{transform_indices = @transform_0, window_bounds = array<i64: 2, 16>}, {pipeline_mode = #tpu.pipeline_mode<synchronous>, transform_indices = @transform_1, window_bounds = array<i64: 16, 896>}, {pipeline_mode = #tpu.pipeline_mode<synchronous>, transform_indices = @transform_2, window_bounds = array<i64: 1, 896>}, {pipeline_mode = #tpu.pipeline_mode<synchronous>, transform_indices = @transform_3, window_bounds = array<i64: 896, 640>}, {pipeline_mode = #tpu.pipeline_mode<synchronous>, transform_indices = @transform_4, window_bounds = array<i64: 1, 640>}, {pipeline_mode = #tpu.pipeline_mode<synchronous>, transform_indices = @transform_5, window_bounds = array<i64: 640, 128>}, {pipeline_mode = #tpu.pipeline_mode<synchronous>, transform_indices = @transform_6, window_bounds = array<i64: 1, 128>}, {transform_indices = @transform_7, window_bounds = array<i64: 2, 128>}]} {
    %c0 = arith.constant 0 : index
    %c0_0 = arith.constant 0 : index
    %0 = vector.load %arg1[%c0, %c0_0] : memref<2x16xf32, #tpu.memory_space<vmem>>, vector<2x16xf32>
    %1 = arith.truncf %0 : vector<2x16xf32> to vector<2x16xbf16>
    %c0_1 = arith.constant 0 : index
    %c0_2 = arith.constant 0 : index
    %2 = vector.load %arg2[%c0_1, %c0_2] : memref<16x896xbf16, #tpu.memory_space<vmem>>, vector<16x896xbf16>
    %cst = arith.constant dense<0.000000e+00> : vector<2x896xf32>
    %3 = tpu.matmul %1, %2, %cst {dimension_numbers = #tpu.dot_dimension_numbers<[1], [0], [0], [1], [0, 0, 1, 1], [], []>} : vector<2x16xbf16>, vector<16x896xbf16>, vector<2x896xf32> -> vector<2x896xf32>
    %c0_3 = arith.constant 0 : index
    %c0_4 = arith.constant 0 : index
    %4 = vector.load %arg3[%c0_3, %c0_4] : memref<1x896xf32, #tpu.memory_space<vmem>>, vector<1x896xf32>
    %5 = vector.broadcast %4 : vector<1x896xf32> to vector<2x896xf32>
    %6 = arith.addf %3, %5 : vector<2x896xf32>
    %cst_5 = arith.constant 0.000000e+00 : f32
    %7 = vector.broadcast %cst_5 : f32 to vector<2x896xf32>
    %8 = arith.maximumf %6, %7 : vector<2x896xf32>
    %9 = arith.truncf %8 : vector<2x896xf32> to vector<2x896xbf16>
    %c0_6 = arith.constant 0 : index
    %c0_7 = arith.constant 0 : index
    %10 = vector.load %arg4[%c0_6, %c0_7] : memref<896x640xbf16, #tpu.memory_space<vmem>>, vector<896x640xbf16>
    %cst_8 = arith.constant dense<0.000000e+00> : vector<2x640xf32>
    %11 = tpu.matmul %9, %10, %cst_8 {dimension_numbers = #tpu.dot_dimension_numbers<[1], [0], [0], [1], [0, 0, 1, 1], [], []>} : vector<2x896xbf16>, vector<896x640xbf16>, vector<2x640xf32> -> vector<2x640xf32>
    %c0_9 = arith.constant 0 : index
    %c0_10 = arith.constant 0 : index
    %12 = vector.load %arg5[%c0_9, %c0_10] : memref<1x640xf32, #tpu.memory_space<vmem>>, vector<1x640xf32>
    %13 = vector.broadcast %12 : vector<1x640xf32> to vector<2x640xf32>
    %14 = arith.addf %11, %13 : vector<2x640xf32>
    %cst_11 = arith.constant 0.000000e+00 : f32
    %15 = vector.broadcast %cst_11 : f32 to vector<2x640xf32>
    %16 = arith.maximumf %14, %15 : vector<2x640xf32>
    %17 = arith.truncf %16 : vector<2x640xf32> to vector<2x640xbf16>
    %c0_12 = arith.constant 0 : index
    %c0_13 = arith.constant 0 : index
    %18 = vector.load %arg6[%c0_12, %c0_13] : memref<640x128xbf16, #tpu.memory_space<vmem>>, vector<640x128xbf16>
    %cst_14 = arith.constant dense<0.000000e+00> : vector<2x128xf32>
    %19 = tpu.matmul %17, %18, %cst_14 {dimension_numbers = #tpu.dot_dimension_numbers<[1], [0], [0], [1], [0, 0, 1, 1], [], []>} : vector<2x640xbf16>, vector<640x128xbf16>, vector<2x128xf32> -> vector<2x128xf32>
    %c0_15 = arith.constant 0 : index
    %c0_16 = arith.constant 0 : index
    %20 = vector.load %arg7[%c0_15, %c0_16] : memref<1x128xf32, #tpu.memory_space<vmem>>, vector<1x128xf32>
    %21 = vector.broadcast %20 : vector<1x128xf32> to vector<2x128xf32>
    %22 = arith.addf %19, %21 : vector<2x128xf32>
    %23 = math.tanh %22 : vector<2x128xf32>
    %c0_17 = arith.constant 0 : index
    %c0_18 = arith.constant 0 : index
    %24 = vector.load %arg8[%c0_17, %c0_18] : memref<2x128xf32, #tpu.memory_space<vmem>>, vector<2x128xf32>
    tpu.vector_store %arg8[%c0_17, %c0_18], %23 {strides = array<i32>} : memref<2x128xf32, #tpu.memory_space<vmem>>, vector<2x128xf32>,
    return
  }
  func.func @transform_0(%arg0: i32) -> (i32, i32) {
    %c0_i32 = arith.constant 0 : i32
    %c0_i32_0 = arith.constant 0 : i32
    return %arg0, %c0_i32 : i32, i32
  }
  func.func @transform_1(%arg0: i32) -> (i32, i32) {
    %c0_i32 = arith.constant 0 : i32
    %c0_i32_0 = arith.constant 0 : i32
    %c0_i32_1 = arith.constant 0 : i32
    return %c0_i32, %c0_i32_0 : i32, i32
  }
  func.func @transform_2(%arg0: i32) -> (i32, i32) {
    %c0_i32 = arith.constant 0 : i32
    %c0_i32_0 = arith.constant 0 : i32
    %c0_i32_1 = arith.constant 0 : i32
    return %c0_i32, %c0_i32_0 : i32, i32
  }
  func.func @transform_3(%arg0: i32) -> (i32, i32) {
    %c0_i32 = arith.constant 0 : i32
    %c0_i32_0 = arith.constant 0 : i32
    %c0_i32_1 = arith.constant 0 : i32
    return %c0_i32, %c0_i32_0 : i32, i32
  }
  func.func @transform_4(%arg0: i32) -> (i32, i32) {
    %c0_i32 = arith.constant 0 : i32
    %c0_i32_0 = arith.constant 0 : i32
    %c0_i32_1 = arith.constant 0 : i32
    return %c0_i32, %c0_i32_0 : i32, i32
  }
  func.func @transform_5(%arg0: i32) -> (i32, i32) {
    %c0_i32 = arith.constant 0 : i32
    %c0_i32_0 = arith.constant 0 : i32
    %c0_i32_1 = arith.constant 0 : i32
    return %c0_i32, %c0_i32_0 : i32, i32
  }
  func.func @transform_6(%arg0: i32) -> (i32, i32) {
    %c0_i32 = arith.constant 0 : i32
    %c0_i32_0 = arith.constant 0 : i32
    %c0_i32_1 = arith.constant 0 : i32
    return %c0_i32, %c0_i32_0 : i32, i32
  }
  func.func @transform_7(%arg0: i32) -> (i32, i32) {
    %c0_i32 = arith.constant 0 : i32
    %c0_i32_0 = arith.constant 0 : i32
    return %arg0, %c0_i32 : i32, i32
  }
}

</mosaic_0001>

<bundles_post_ra>
// kernel: actor_forward.1
= control target key start
LH: loop header
LB: loop body
LE: loop exit
PB: predicated region body
PF: predicated region fallthrough
CT: control target
= control target key end

     0   :  { %12 = vsyncpa [#allocation3], 0  ;;  %s5042_s0 = inlined_call_operand.hbm [shape: f32[2,16], index: 0, kind: input, shape index: {}]   ;;  %s5043_s1 = inlined_call_operand.hbm [shape: bf16[16,896], index: 1, kind: input, shape index: {}]   ;;  %s5044_s2 = inlined_call_operand.hbm [shape: f32[1,896], index: 2, kind: input, shape index: {}]   ;;  %s5045_s3 = inlined_call_operand.hbm [shape: bf16[896,640], index: 3, kind: input, shape index: {}]   ;;  %s5046_s4 = inlined_call_operand.hbm [shape: f32[1,640], index: 4, kind: input, shape index: {}]   ;;  %s5047_s5 = inlined_call_operand.hbm [shape: bf16[640,128], index: 5, kind: input, shape index: {}]   ;;  %s5048_s6 = inlined_call_operand.hbm [shape: f32[1,128], index: 6, kind: input, shape index: {}]   ;;  %s5049_s7 = inlined_call_operand.hbm [shape: f32[2,128], index: 7, kind: output, shape index: {}]  }
   0x1   :  { %13 = vsyncpa [#allocation6], 0 }
   0x2   :  { %14 = vsyncpa [#allocation9], 0 }
   0x3   :  { %15 = vsyncpa [#allocation12], 0  ;;  %s32_s26 = sshll.u32 %s5043_s1, 4  ;;  %s33_s26 = int_to_ptr.hbm [resolvable:$true] %s32_s26 }
   0x4   :  { %16 = vsyncpa [#allocation4], 0  ;;  %s4841_s27 = smov [#allocation5]   ;;  %s56_s8 = sshll.u32 %s5045_s3, 4  ;;  %s57_s8 = int_to_ptr.hbm [resolvable:$true] %s56_s8 }
   0x5   :  { %s34_s28 = sshll.u32 %s4841_s27, 4  ;;  %s4842_s9 = smov 448   ;;  %s35_s28 = int_to_ptr.vmem [resolvable:$true] %s34_s28 }
   0x6   :  { %s4843_s10 = smov 28   ;;  %s4844_s11 = smov [#allocation8]  }
   0x7   :  { %40 = dma.hbm_to_vmem [thread:$0]  %s33_s26, 896, %s35_s28, [#allocation6], %s4842_s9, %s4842_s9, %s4843_s10  }
   0x8   :  { %s58_s12 = sshll.u32 %s4844_s11, 4  ;;  %s4845_s13 = smov 320   ;;  %s59_s12 = int_to_ptr.vmem [resolvable:$true] %s58_s12 }
   0x9   :  { %s4846_s14 = smov 20   ;;  %s80_s16 = sshll.u32 %s5047_s5, 4  ;;  %s81_s16 = int_to_ptr.hbm [resolvable:$true] %s80_s16 }
   0xa   :  { %64 = dma.hbm_to_vmem [thread:$0]  %s57_s8, 35840, %s59_s12, [#allocation9], %s4845_s13, %s4845_s13, %s4846_s14  }
   0xb   :  { %s4847_s17 = smov [#allocation11]   ;;  %s22_s20 = sshll.u32 %s5042_s0, 4  ;;  %s23_s20 = int_to_ptr.hbm [resolvable:$true] %s22_s20 }
   0xc   :  { %s82_s18 = sshll.u32 %s4847_s17, 4  ;;  %s4848_s21 = smov 64   ;;  %s83_s18 = int_to_ptr.vmem [resolvable:$true] %s82_s18 }
   0xd   :  { %s4849_s22 = smov 4   ;;  %s4850_s23 = smov [#allocation2]  }
   0xe   :  { %88 = dma.hbm_to_vmem [thread:$0]  %s81_s16, 5120, %s83_s18, [#allocation12], %s4848_s21, %s4848_s21, %s4849_s22  }
   0xf   :  { %s24_s24 = sshll.u32 %s4850_s23, 4  ;;  %s46_s27 = sshll.u32 %s5044_s2, 4  ;;  %s25_s24 = int_to_ptr.vmem [resolvable:$true] %s24_s24  ;;  %s47_s27 = int_to_ptr.hbm [resolvable:$true] %s46_s27 }
  0x10   :  { %27 = dma.hbm_to_vmem [thread:$0]  %s23_s20, 32, %s25_s24, [#allocation3]  }
  0x11   :  { %s70_s29 = sshll.u32 %s5046_s4, 4  ;;  %s4851_s30 = smov [#allocation7]   ;;  %s71_s29 = int_to_ptr.hbm [resolvable:$true] %s70_s29 }
  0x12   :  { %s48_s8 = sshll.u32 %s4851_s30, 4  ;;  %s4852_s0 = smov [#allocation10]   ;;  %s49_s8 = int_to_ptr.vmem [resolvable:$true] %s48_s8 }
  0x13   :  { %51 = dma.hbm_to_vmem [thread:$0]  %s47_s27, 112, %s49_s8, [#allocation6]  }
  0x14   :  { %s72_s9 = sshll.u32 %s4852_s0, 4  ;;  %s94_s12 = sshll.u32 %s5048_s6, 4  ;;  %s73_s9 = int_to_ptr.vmem [resolvable:$true] %s72_s9  ;;  %s95_s12 = int_to_ptr.hbm [resolvable:$true] %s94_s12 }
  0x15   :  { %75 = dma.hbm_to_vmem [thread:$0]  %s71_s29, 80, %s73_s9, [#allocation9]  }
  0x16   :  { %s4853_s2 = smov [#allocation13]  }
  0x17   :  { %s96_s13 = sshll.u32 %s4853_s2, 4  ;;  %s97_s13 = int_to_ptr.vmem [resolvable:$true] %s96_s13 }
  0x18   :  { %99 = dma.hbm_to_vmem [thread:$0]  %s95_s12, 16, %s97_s13, [#allocation12]  }
  0x19   :  { %4831 = dma.done.wait [#allocation3], 32  }
  0x1a   :  { %4832 = vsyncadd [#allocation3], 4294967264 }
  0x1b   :  { %4833 = dma.done.wait [#allocation6], 1008  }
  0x1c   :  { %4834 = vsyncadd [#allocation6], 4294966288 }
  0x1d   :  { %4835 = dma.done.wait [#allocation9], 35920  }
  0x1e   :  { %4836 = vsyncadd [#allocation9], 4294931376 }
  0x1f   :  { %4837 = dma.done.wait [#allocation12], 5136  }
  0x20   :  { %4838 = vsyncadd [#allocation12], 4294962160  ;;  %vm191_vm0 = vcmask 130048   ;;  %v2982_v0 = vld [vmem:[#allocation5] sm:$0xf]  ;;  %s4854_s4 = smov [#allocation14]  }
  0x21   :  { %v4298_v1 = vld [vmem:[#allocation5 + $0x18] sm:$0xf0]  ;;  %v4295_v2 = vld [vmem:[#allocation5 + $0x4] sm:$0xf]  ;;  %v2984_v4 = vld [vmem:[#allocation5 + $0x1c] sm:$0xf0] }
  0x22   :  { %v2983_v3 = vor.u32 %v4298_v1, %v2982_v0  ;;  %v2990_v5 = vld [vmem:[#allocation5 + $0x8] sm:$0xf]  ;;  %v4299_v6 = vld [vmem:[#allocation5 + $0x20] sm:$0xf0]  ;;  %v2987_v7 = vor.u32 %v4295_v2, %v2984_v4  ;;  %v4296_v9 = vld [vmem:[#allocation5 + $0xc] sm:$0xf] }
  0x23   :  { %v2991_v8 = vor.u32 %v4299_v6, %v2990_v5  ;;  %v2992_v10 = vld [vmem:[#allocation5 + $0x24] sm:$0xf0]  ;;  %v129_v11 = vld [vmem:[#allocation2] sm:$0x3]  ;;  %v2998_v14 = vld [vmem:[#allocation5 + $0x10] sm:$0xf] }
  0x24   :  { %202 = vmatpush.bf16.msra.mxu0 %v2983_v3  ;;  %v2995_v12 = vor.u32 %v4296_v9, %v2992_v10  ;;  %v4916_v13 = vpack.c.bf16 %v129_v11, %v129_v11  ;;  %v4300_v15 = vld [vmem:[#allocation5 + $0x28] sm:$0xf0]  ;;  %v4297_v16 = vld [vmem:[#allocation5 + $0x14] sm:$0xf]  ;;  %215 = vmatpush.bf16.msra.mxu1 %v2987_v7  ;;  %v3000_v18 = vld [vmem:[#allocation5 + $0x2c] sm:$0xf0] }
  0x25   :  { %228 = vmatpush.bf16.msra.mxu2 %v2991_v8  ;;  %v2999_v17 = vor.u32 %v4300_v15, %v2998_v14  ;;  %v3006_v19 = vld [vmem:[#allocation5 + $0x18] sm:$0xf]  ;;  %v4301_v20 = vld [vmem:[#allocation5 + $0x30] sm:$0xf0]  ;;  %v3003_v21 = vor.u32 %v4297_v16, %v3000_v18  ;;  %v4339_v24 = vld [vmem:[#allocation8 + $0x128] sm:$0xf0] }
  0x26   :  { %241 = vmatpush.bf16.msra.mxu3 %v2995_v12  ;;  %v3007_v22 = vor.u32 %v4301_v20, %v3006_v19  ;;  %v3157_v23 = vld [vmem:[#allocation8 + $0x118] sm:$0xf]  ;;  %v4379_v27 = vld [vmem:[#allocation8 + $0x268] sm:$0xf0]  ;;  %v3137_v28 = vld [vmem:[#allocation8 + $0xf0] sm:$0xf] }
  0x27   :  { %v3317_v25 = vld [vmem:[#allocation8 + $0x258] sm:$0xf]  ;;  %3008 = vmatmul.msk.bf16.vlgmr.msra.gmra.mxu0 %vm191_vm0, %v4916_v13  ;;  %v3158_v26 = vor.u32 %v4339_v24, %v3157_v23  ;;  %v4334_v29 = vld [vmem:[#allocation8 + $0x100] sm:$0xf0]  ;;  %3009 = vmatmul.msk.bf16.vlgmr.msra.gmra.mxu1 %vm191_vm0, %v4916_v13  ;;  %v3297_v31 = vld [vmem:[#allocation8 + $0x230] sm:$0xf] }
  0x28   :  { %3010 = vmatmul.msk.bf16.vlgmr.msra.gmra.mxu2 %vm191_vm0, %v4916_v13  ;;  %v3318_v30 = vor.u32 %v4379_v27, %v3317_v25  ;;  %v4374_v32 = vld [vmem:[#allocation8 + $0x240] sm:$0xf0]  ;;  %v3477_v33 = vld [vmem:[#allocation8 + $0x398] sm:$0xf]  ;;  %254 = vmatpush.bf16.msrb.mxu0 %v2999_v17  ;;  %v4419_v34 = vld [vmem:[#allocation8 + $0x3a8] sm:$0xf0]  ;;  %v3138_v41 = vor.u32 %v4334_v29, %v3137_v28 }
  0x29   :  { %3011 = vmatmul.msk.bf16.vlgmr.msra.gmra.mxu3 %vm191_vm0, %v4916_v13  ;;  %v3637_v35 = vld [vmem:[#allocation8 + $0x4d8] sm:$0xf]  ;;  %v4459_v36 = vld [vmem:[#allocation8 + $0x4e8] sm:$0xf0]  ;;  %267 = vmatpush.bf16.msrb.mxu1 %v3003_v21  ;;  %v3478_v37 = vor.u32 %v4419_v34, %v3477_v33  ;;  %v3117_v39 = vld [vmem:[#allocation8 + $0xc8] sm:$0xf]  ;;  %v3298_v42 = vor.u32 %v4374_v32, %v3297_v31 }
  0x2a   :  { %280 = vmatpush.bf16.msrb.mxu2 %v3007_v22  ;;  %v3638_v38 = vor.u32 %v4459_v36, %v3637_v35  ;;  %v4329_v40 = vld [vmem:[#allocation8 + $0xd8] sm:$0xf0]  ;;  %2104 = vmatpush.bf16.msrb.mxu3 %v3158_v26  ;;  %v3277_v43 = vld [vmem:[#allocation8 + $0x208] sm:$0xf]  ;;  %v3457_v44 = vld [vmem:[#allocation8 + $0x370] sm:$0xf] }
  0x2b   :  { %v4414_v45 = vld [vmem:[#allocation8 + $0x380] sm:$0xf0]  ;;  %v4369_v46 = vld [vmem:[#allocation8 + $0x218] sm:$0xf0]  ;;  %v3617_v48 = vld [vmem:[#allocation8 + $0x4b0] sm:$0xf]  ;;  %v3118_v54 = vor.u32 %v4329_v40, %v3117_v39 }
  0x2c   :  { %2117 = vmatpush.bf16.msra.mxu0 %v3318_v30  ;;  %v3458_v47 = vor.u32 %v4414_v45, %v3457_v44  ;;  %v4454_v49 = vld [vmem:[#allocation8 + $0x4c0] sm:$0xf0]  ;;  %v3437_v51 = vld [vmem:[#allocation8 + $0x348] sm:$0xf]  ;;  %v4409_v52 = vld [vmem:[#allocation8 + $0x358] sm:$0xf0]  ;;  %v3278_v55 = vor.u32 %v4369_v46, %v3277_v43 }
  0x2d   :  { %2130 = vmatpush.bf16.msra.mxu1 %v3478_v37  ;;  %v3618_v50 = vor.u32 %v4454_v49, %v3617_v48  ;;  %v3597_v53 = vld [vmem:[#allocation8 + $0x488] sm:$0xf]  ;;  %v4449_v56 = vld [vmem:[#allocation8 + $0x498] sm:$0xf0]  ;;  %v3097_v57 = vld [vmem:[#allocation8 + $0xa0] sm:$0xf]  ;;  %v3438_v59 = vor.u32 %v4409_v52, %v3437_v51 }
  0x2e   :  { %2143 = vmatpush.bf16.msra.mxu2 %v3638_v38  ;;  %2105 = vmatpush.bf16.msrb.mxu3 %v3138_v41  ;;  %v4324_v58 = vld [vmem:[#allocation8 + $0xb0] sm:$0xf0]  ;;  %v3598_v60 = vor.u32 %v4449_v56, %v3597_v53  ;;  %v3257_v61 = vld [vmem:[#allocation8 + $0x1e0] sm:$0xf]  ;;  %v3077_v4 = vld [vmem:[#allocation8 + $0x78] sm:$0xf] }
  0x2f   :  { %v4364_v62 = vld [vmem:[#allocation8 + $0x1f0] sm:$0xf0]  ;;  %v3417_v63 = vld [vmem:[#allocation8 + $0x320] sm:$0xf]  ;;  %v3098_v1 = vor.u32 %v4324_v58, %v3097_v57  ;;  %v4319_v5 = vld [vmem:[#allocation8 + $0x88] sm:$0xf0] }
  0x30   :  { %2118 = vmatpush.bf16.msra.mxu0 %v3298_v42  ;;  %v4404_v0 = vld [vmem:[#allocation8 + $0x330] sm:$0xf0]  ;;  %v3577_v2 = vld [vmem:[#allocation8 + $0x460] sm:$0xf]  ;;  %v3258_v6 = vor.u32 %v4364_v62, %v3257_v61  ;;  %v3237_v7 = vld [vmem:[#allocation8 + $0x1b8] sm:$0xf]  ;;  %v3078_v14 = vor.u32 %v4319_v5, %v3077_v4 }
  0x31   :  { %2131 = vmatpush.bf16.msra.mxu1 %v3458_v47  ;;  %v4444_v3 = vld [vmem:[#allocation8 + $0x470] sm:$0xf0]  ;;  %v3418_v8 = vor.u32 %v4404_v0, %v3417_v63  ;;  %v4359_v9 = vld [vmem:[#allocation8 + $0x1c8] sm:$0xf0]  ;;  %v3397_v11 = vld [vmem:[#allocation8 + $0x2f8] sm:$0xf] }
  0x32   :  { %2144 = vmatpush.bf16.msra.mxu2 %v3618_v50  ;;  %2106 = vmatpush.bf16.msrb.mxu3 %v3118_v54  ;;  %v3578_v10 = vor.u32 %v4444_v3, %v3577_v2  ;;  %v4399_v12 = vld [vmem:[#allocation8 + $0x308] sm:$0xf0]  ;;  %v3557_v15 = vld [vmem:[#allocation8 + $0x438] sm:$0xf]  ;;  %v3057_v17 = vld [vmem:[#allocation8 + $0x50] sm:$0xf]  ;;  %v3238_v19 = vor.u32 %v4359_v9, %v3237_v7 }
  0x33   :  { %v4439_v16 = vld [vmem:[#allocation8 + $0x448] sm:$0xf0]  ;;  %v4314_v18 = vld [vmem:[#allocation8 + $0x60] sm:$0xf0]  ;;  %v3217_v20 = vld [vmem:[#allocation8 + $0x190] sm:$0xf]  ;;  %v3398_v21 = vor.u32 %v4399_v12, %v3397_v11 }
  0x34   :  { %2119 = vmatpush.bf16.msra.mxu0 %v3278_v55  ;;  %v4354_v22 = vld [vmem:[#allocation8 + $0x1a0] sm:$0xf0]  ;;  %v3558_v23 = vor.u32 %v4439_v16, %v3557_v15  ;;  %v3377_v24 = vld [vmem:[#allocation8 + $0x2d0] sm:$0xf]  ;;  %v3058_v26 = vor.u32 %v4314_v18, %v3057_v17  ;;  %v3037_v29 = vld [vmem:[#allocation8 + $0x28] sm:$0xf] }
  0x35   :  { %2132 = vmatpush.bf16.msra.mxu1 %v3438_v59  ;;  %v4394_v25 = vld [vmem:[#allocation8 + $0x2e0] sm:$0xf0]  ;;  %v3537_v27 = vld [vmem:[#allocation8 + $0x410] sm:$0xf]  ;;  %v4309_v30 = vld [vmem:[#allocation8 + $0x38] sm:$0xf0] }
  0x36   :  { %2145 = vmatpush.bf16.msra.mxu2 %v3598_v60  ;;  %2107 = vmatpush.bf16.msrb.mxu3 %v3098_v1  ;;  %v4434_v28 = vld [vmem:[#allocation8 + $0x420] sm:$0xf0]  ;;  %v3197_v31 = vld [vmem:[#allocation8 + $0x168] sm:$0xf]  ;;  %v3378_v32 = vor.u32 %v4394_v25, %v3377_v24  ;;  %v4349_v33 = vld [vmem:[#allocation8 + $0x178] sm:$0xf0]  ;;  %v3038_v37 = vor.u32 %v4309_v30, %v3037_v29 }
  0x37   :  { %3012 = vmatmul.msk.bf16.vlgmr.msrb.gmra.mxu0 %vm191_vm0, %v4916_v13  ;;  %3013 = vmatmul.msk.bf16.vlgmr.msrb.gmra.mxu1 %vm191_vm0, %v4916_v13  ;;  %v3538_v34 = vor.u32 %v4434_v28, %v3537_v27  ;;  %v3357_v35 = vld [vmem:[#allocation8 + $0x2a8] sm:$0xf]  ;;  %v4389_v36 = vld [vmem:[#allocation8 + $0x2b8] sm:$0xf0]  ;;  %v3017_v38 = vld [vmem:[#allocation8] sm:$0xf]  ;;  %v3198_v44 = vor.u32 %v4349_v33, %v3197_v31 }
  0x38   :  { %3014 = vmatmul.msk.bf16.vlgmr.msrb.gmra.mxu2 %vm191_vm0, %v4916_v13  ;;  %2120 = vmatpush.bf16.msra.mxu0 %v3258_v6  ;;  %v3218_v13 = vor.u32 %v4354_v22, %v3217_v20  ;;  %v3517_v39 = vld [vmem:[#allocation8 + $0x3e8] sm:$0xf]  ;;  %v4429_v40 = vld [vmem:[#allocation8 + $0x3f8] sm:$0xf0]  ;;  %v4304_v41 = vld [vmem:[#allocation8 + $0x10] sm:$0xf0]  ;;  %v3358_v48 = vor.u32 %v4389_v36, %v3357_v35 }
  0x39   :  { %2133 = vmatpush.bf16.msra.mxu1 %v3418_v8  ;;  %v3177_v42 = vld [vmem:[#allocation8 + $0x140] sm:$0xf]  ;;  %v4344_v43 = vld [vmem:[#allocation8 + $0x150] sm:$0xf0]  ;;  %v3797_v45 = vld [vmem:[#allocation8 + $0x618] sm:$0xf]  ;;  %v3518_v50 = vor.u32 %v4429_v40, %v3517_v39  ;;  %v3018_v53 = vor.u32 %v4304_v41, %v3017_v38 }
  0x3a   :  { %2146 = vmatpush.bf16.msra.mxu2 %v3578_v10  ;;  %2108 = vmatpush.bf16.msrb.mxu3 %v3078_v14  ;;  %v4499_v46 = vld [vmem:[#allocation8 + $0x628] sm:$0xf0]  ;;  %v3957_v47 = vld [vmem:[#allocation8 + $0x758] sm:$0xf]  ;;  %v3337_v51 = vld [vmem:[#allocation8 + $0x280] sm:$0xf]  ;;  %v3178_v61 = vor.u32 %v4344_v43, %v3177_v42 }
  0x3b   :  { %v4539_v49 = vld [vmem:[#allocation8 + $0x768] sm:$0xf0]  ;;  %v4384_v52 = vld [vmem:[#allocation8 + $0x290] sm:$0xf0]  ;;  %v3497_v54 = vld [vmem:[#allocation8 + $0x3c0] sm:$0xf]  ;;  %v3798_v57 = vor.u32 %v4499_v46, %v3797_v45 }
  0x3c   :  { %2121 = vmatpush.bf16.msra.mxu0 %v3238_v19  ;;  %v4424_v55 = vld [vmem:[#allocation8 + $0x3d0] sm:$0xf0]  ;;  %v4117_v56 = vld [vmem:[#allocation8 + $0x898] sm:$0xf]  ;;  %v4579_v58 = vld [vmem:[#allocation8 + $0x8a8] sm:$0xf0]  ;;  %v3338_v0 = vor.u32 %v4384_v52, %v3337_v51  ;;  %v3958_v1 = vor.u32 %v4539_v49, %v3957_v47 }
  0x3d   :  { %2134 = vmatpush.bf16.msra.mxu1 %v3398_v21  ;;  %v4337_v59 = vld [vmem:[#allocation8 + $0x11c] sm:$0xf]  ;;  %v3159_v60 = vld [vmem:[#allocation8 + $0x12c] sm:$0xf0]  ;;  %v4494_v63 = vld [vmem:[#allocation8 + $0x600] sm:$0xf0]  ;;  %v3498_v2 = vor.u32 %v4424_v55, %v3497_v54  ;;  %v4118_v5 = vor.u32 %v4579_v58, %v4117_v56 }
  0x3e   :  { %2147 = vmatpush.bf16.msra.mxu2 %v3558_v23  ;;  %2109 = vmatpush.bf16.msrb.mxu3 %v3058_v26  ;;  %v3777_v62 = vld [vmem:[#allocation8 + $0x5f0] sm:$0xf]  ;;  %v4534_v4 = vld [vmem:[#allocation8 + $0x740] sm:$0xf0]  ;;  %v3162_v6 = vor.u32 %v4337_v59, %v3159_v60  ;;  %v4332_v10 = vld [vmem:[#allocation8 + $0xf4] sm:$0xf] }
  0x3f   :  { %v3937_v3 = vld [vmem:[#allocation8 + $0x730] sm:$0xf]  ;;  %v3778_v8 = vor.u32 %v4494_v63, %v3777_v62  ;;  %v4574_v9 = vld [vmem:[#allocation8 + $0x880] sm:$0xf0]  ;;  %v3139_v11 = vld [vmem:[#allocation8 + $0x104] sm:$0xf0] }
  0x40   :  { %2122 = vmatpush.bf16.msra.mxu0 %v3218_v13  ;;  %v4097_v7 = vld [vmem:[#allocation8 + $0x870] sm:$0xf]  ;;  %v3757_v12 = vld [vmem:[#allocation8 + $0x5c8] sm:$0xf]  ;;  %v4489_v14 = vld [vmem:[#allocation8 + $0x5d8] sm:$0xf0]  ;;  %v3938_v15 = vor.u32 %v4534_v4, %v3937_v3  ;;  %v3142_v19 = vor.u32 %v4332_v10, %v3139_v11 }
  0x41   :  { %2135 = vmatpush.bf16.msra.mxu1 %v3378_v32  ;;  %v3917_v16 = vld [vmem:[#allocation8 + $0x708] sm:$0xf]  ;;  %v4529_v17 = vld [vmem:[#allocation8 + $0x718] sm:$0xf0]  ;;  %v4098_v18 = vor.u32 %v4574_v9, %v4097_v7  ;;  %v3758_v21 = vor.u32 %v4489_v14, %v3757_v12  ;;  %v4327_v23 = vld [vmem:[#allocation8 + $0xcc] sm:$0xf] }
  0x42   :  { %2148 = vmatpush.bf16.msra.mxu2 %v3538_v34  ;;  %2110 = vmatpush.bf16.msrb.mxu3 %v3038_v37  ;;  %v4077_v20 = vld [vmem:[#allocation8 + $0x848] sm:$0xf]  ;;  %v4569_v22 = vld [vmem:[#allocation8 + $0x858] sm:$0xf0]  ;;  %v3119_v24 = vld [vmem:[#allocation8 + $0xdc] sm:$0xf0]  ;;  %v3918_v27 = vor.u32 %v4529_v17, %v3917_v16 }
  0x43   :  { %v3737_v25 = vld [vmem:[#allocation8 + $0x5a0] sm:$0xf]  ;;  %v4484_v26 = vld [vmem:[#allocation8 + $0x5b0] sm:$0xf0]  ;;  %v4078_v30 = vor.u32 %v4569_v22, %v4077_v20  ;;  %v3122_v13 = vor.u32 %v4327_v23, %v3119_v24  ;;  %v4322_v34 = vld [vmem:[#allocation8 + $0xa4] sm:$0xf] }
  0x44   :  { %2123 = vmatpush.bf16.msra.mxu0 %v3198_v44  ;;  %v3897_v28 = vld [vmem:[#allocation8 + $0x6e0] sm:$0xf]  ;;  %v4524_v29 = vld [vmem:[#allocation8 + $0x6f0] sm:$0xf0]  ;;  %v3738_v32 = vor.u32 %v4484_v26, %v3737_v25  ;;  %v3099_v35 = vld [vmem:[#allocation8 + $0xb4] sm:$0xf0] }
  0x45   :  { %2136 = vmatpush.bf16.msra.mxu1 %v3358_v48  ;;  %v4057_v31 = vld [vmem:[#allocation8 + $0x820] sm:$0xf]  ;;  %v4564_v33 = vld [vmem:[#allocation8 + $0x830] sm:$0xf0]  ;;  %v3717_v36 = vld [vmem:[#allocation8 + $0x578] sm:$0xf]  ;;  %v3898_v38 = vor.u32 %v4524_v29, %v3897_v28  ;;  %v3102_v42 = vor.u32 %v4322_v34, %v3099_v35 }
  0x46   :  { %2149 = vmatpush.bf16.msra.mxu2 %v3518_v50  ;;  %2111 = vmatpush.bf16.msrb.mxu3 %v3018_v53  ;;  %v4479_v37 = vld [vmem:[#allocation8 + $0x588] sm:$0xf0]  ;;  %v3877_v39 = vld [vmem:[#allocation8 + $0x6b8] sm:$0xf]  ;;  %v4058_v41 = vor.u32 %v4564_v33, %v4057_v31  ;;  %v3697_v44 = vld [vmem:[#allocation8 + $0x550] sm:$0xf] }
  0x47   :  { %v4519_v40 = vld [vmem:[#allocation8 + $0x6c8] sm:$0xf0]  ;;  %v3718_v43 = vor.u32 %v4479_v37, %v3717_v36  ;;  %v4474_v45 = vld [vmem:[#allocation8 + $0x560] sm:$0xf0]  ;;  %v3857_v47 = vld [vmem:[#allocation8 + $0x690] sm:$0xf] }
  0x48   :  { %2124 = vmatpush.bf16.msra.mxu0 %v3178_v61  ;;  %v3878_v46 = vor.u32 %v4519_v40, %v3877_v39  ;;  %v4514_v48 = vld [vmem:[#allocation8 + $0x6a0] sm:$0xf0]  ;;  %v3698_v49 = vor.u32 %v4474_v45, %v3697_v44  ;;  %v4037_v51 = vld [vmem:[#allocation8 + $0x7f8] sm:$0xf]  ;;  %v4559_v52 = vld [vmem:[#allocation8 + $0x808] sm:$0xf0] }
  0x49   :  { %2137 = vmatpush.bf16.msra.mxu1 %v3338_v0  ;;  %v3858_v50 = vor.u32 %v4514_v48, %v3857_v47  ;;  %v4317_v53 = vld [vmem:[#allocation8 + $0x7c] sm:$0xf]  ;;  %v4038_v54 = vor.u32 %v4559_v52, %v4037_v51  ;;  %v3079_v55 = vld [vmem:[#allocation8 + $0x8c] sm:$0xf0]  ;;  %v3837_v60 = vld [vmem:[#allocation8 + $0x668] sm:$0xf] }
  0x4a   :  { %2156 = vmatpush.bf16.msra.mxu3 %v3798_v57  ;;  %2150 = vmatpush.bf16.msra.mxu2 %v3498_v2  ;;  %v3082_v56 = vor.u32 %v4317_v53, %v3079_v55  ;;  %v3677_v57 = vld [vmem:[#allocation8 + $0x528] sm:$0xf]  ;;  %v4469_v58 = vld [vmem:[#allocation8 + $0x538] sm:$0xf0]  ;;  %v4017_v63 = vld [vmem:[#allocation8 + $0x7d0] sm:$0xf] }
  0x4b   :  { %v3678_v59 = vor.u32 %v4469_v58, %v3677_v57  ;;  %v4509_v61 = vld [vmem:[#allocation8 + $0x678] sm:$0xf0]  ;;  %v4554_v0 = vld [vmem:[#allocation8 + $0x7e0] sm:$0xf0]  ;;  %v3059_v3 = vld [vmem:[#allocation8 + $0x64] sm:$0xf0] }
  0x4c   :  { %2169 = vmatpush.bf16.msrb.mxu0 %v3958_v1  ;;  %v3838_v62 = vor.u32 %v4509_v61, %v3837_v60  ;;  %v4312_v1 = vld [vmem:[#allocation8 + $0x54] sm:$0xf]  ;;  %v4018_v2 = vor.u32 %v4554_v0, %v4017_v63  ;;  %v3817_v7 = vld [vmem:[#allocation8 + $0x640] sm:$0xf]  ;;  %v3997_v11 = vld [vmem:[#allocation8 + $0x7a8] sm:$0xf] }
  0x4d   :  { %2182 = vmatpush.bf16.msrb.mxu1 %v4118_v5  ;;  %v3062_v4 = vor.u32 %v4312_v1, %v3059_v3  ;;  %v3657_v5 = vld [vmem:[#allocation8 + $0x500] sm:$0xf]  ;;  %v4504_v9 = vld [vmem:[#allocation8 + $0x650] sm:$0xf0]  ;;  %v4549_v12 = vld [vmem:[#allocation8 + $0x7b8] sm:$0xf0] }
  0x4e   :  { %2195 = vmatpush.bf16.msrb.mxu2 %v3162_v6  ;;  %2157 = vmatpush.bf16.msra.mxu3 %v3778_v8  ;;  %v4464_v6 = vld [vmem:[#allocation8 + $0x510] sm:$0xf0]  ;;  %v3818_v10 = vor.u32 %v4504_v9, %v3817_v7  ;;  %v3998_v14 = vor.u32 %v4549_v12, %v3997_v11  ;;  %v3039_v16 = vld [vmem:[#allocation8 + $0x3c] sm:$0xf0]  ;;  %v3019_v22 = vld [vmem:[#allocation8 + $0x14] sm:$0xf0] }
  0x4f   :  { %v3658_v8 = vor.u32 %v4464_v6, %v3657_v5  ;;  %v4932_v24 = vld [vmem:[#allocation7] sm:$0xff]  ;;  %v3479_v33 = vld [vmem:[#allocation8 + $0x3ac] sm:$0xf0]  ;;  %v4412_v44 = vld [vmem:[#allocation8 + $0x374] sm:$0xf]  ;;  %s2965_s6 = sshll.u32 %s4854_s4, 4  ;;  %s2966_s6 = int_to_ptr.vmem [resolvable:$true] %s2965_s6 }
  0x50   :  { %2170 = vmatpush.bf16.msrb.mxu0 %v3938_v15  ;;  %v4307_v15 = vld [vmem:[#allocation8 + $0x2c] sm:$0xf]  ;;  %v141_v25 = vperm.slane %v4932_v24, 0  ;;  %v142_v26 = vperm.slane %v4932_v24, 1  ;;  %v143_v36 = vperm.slane %v4932_v24, 2  ;;  %v144_v39 = vperm.slane %v4932_v24, 3 }
  0x51   :  { %2183 = vmatpush.bf16.msrb.mxu1 %v4098_v18  ;;  %v3042_v17 = vor.u32 %v4307_v15, %v3039_v16  ;;  %v3977_v18 = vld [vmem:[#allocation8 + $0x780] sm:$0xf]  ;;  %v3459_v45 = vld [vmem:[#allocation8 + $0x384] sm:$0xf0]  ;;  %v4457_v51 = vld [vmem:[#allocation8 + $0x4dc] sm:$0xf] }
  0x52   :  { %2196 = vmatpush.bf16.msrb.mxu2 %v3142_v19  ;;  %2158 = vmatpush.bf16.msra.mxu3 %v3758_v21  ;;  %v4544_v19 = vld [vmem:[#allocation8 + $0x790] sm:$0xf0]  ;;  %v4302_v21 = vld [vmem:[#allocation8 + $0x4] sm:$0xf]  ;;  %v3639_v52 = vld [vmem:[#allocation8 + $0x4ec] sm:$0xf0] }
  0x53   :  { %v3978_v20 = vor.u32 %v4544_v19, %v3977_v18  ;;  %v3022_v23 = vor.u32 %v4302_v21, %v3019_v22  ;;  %v4497_v53 = vld [vmem:[#allocation8 + $0x61c] sm:$0xf]  ;;  %v3799_v57 = vld [vmem:[#allocation8 + $0x62c] sm:$0xf0]  ;;  %v4367_v58 = vld [vmem:[#allocation8 + $0x20c] sm:$0xf]  ;;  %v3642_v0 = vor.u32 %v4457_v51, %v3639_v52 }
  0x54   :  { %2171 = vmatpush.bf16.msrb.mxu0 %v3918_v27  ;;  %v4407_v61 = vld [vmem:[#allocation8 + $0x34c] sm:$0xf]  ;;  %v145_v1 = vperm.slane %v4932_v24, 4  ;;  %v3802_v3 = vor.u32 %v4497_v53, %v3799_v57  ;;  %v4452_v5 = vld [vmem:[#allocation8 + $0x4b4] sm:$0xf]  ;;  %s2967_s15 = sshll.u32 %s5049_s7, 4  ;;  %s2968_s15 = int_to_ptr.hbm [resolvable:$true] %s2967_s15 }
  0x55   :  { %2184 = vmatpush.bf16.msrb.mxu1 %v4078_v30  ;;  %v4377_v30 = vld [vmem:[#allocation8 + $0x25c] sm:$0xf]  ;;  %v3619_v6 = vld [vmem:[#allocation8 + $0x4c4] sm:$0xf0]  ;;  %v4492_v7 = vld [vmem:[#allocation8 + $0x5f4] sm:$0xf] }
  0x56   :  { %2197 = vmatpush.bf16.msrb.mxu2 %v3122_v13  ;;  %2159 = vmatpush.bf16.msra.mxu3 %v3738_v32  ;;  %v3319_v13 = vld [vmem:[#allocation8 + $0x26c] sm:$0xf0]  ;;  %v4417_v32 = vld [vmem:[#allocation8 + $0x39c] sm:$0xf]  ;;  %v4362_v11 = vld [vmem:[#allocation8 + $0x1e4] sm:$0xf]  ;;  %v3622_v18 = vor.u32 %v4452_v5, %v3619_v6 }
  0x57   :  { %v3322_v37 = vor.u32 %v4377_v30, %v3319_v13  ;;  %v3482_v40 = vor.u32 %v4417_v32, %v3479_v33  ;;  %v3259_v12 = vld [vmem:[#allocation8 + $0x1f4] sm:$0xf0]  ;;  %v4402_v15 = vld [vmem:[#allocation8 + $0x324] sm:$0xf]  ;;  %v4447_v22 = vld [vmem:[#allocation8 + $0x48c] sm:$0xf] }
  0x58   :  { %2172 = vmatpush.bf16.msrb.mxu0 %v3898_v38  ;;  %v3419_v16 = vld [vmem:[#allocation8 + $0x334] sm:$0xf0]  ;;  %v3262_v21 = vor.u32 %v4362_v11, %v3259_v12  ;;  %v3759_v30 = vld [vmem:[#allocation8 + $0x5dc] sm:$0xf0]  ;;  %v4357_v13 = vld [vmem:[#allocation8 + $0x1bc] sm:$0xf] }
  0x59   :  { %2185 = vmatpush.bf16.msrb.mxu1 %v4058_v41  ;;  %v4372_v41 = vld [vmem:[#allocation8 + $0x234] sm:$0xf]  ;;  %v3239_v32 = vld [vmem:[#allocation8 + $0x1cc] sm:$0xf0]  ;;  %v4397_v33 = vld [vmem:[#allocation8 + $0x2fc] sm:$0xf] }
  0x5a   :  { %2198 = vmatpush.bf16.msrb.mxu2 %v3102_v42  ;;  %2160 = vmatpush.bf16.msra.mxu3 %v3718_v43  ;;  %v3299_v42 = vld [vmem:[#allocation8 + $0x244] sm:$0xf0]  ;;  %v4392_v52 = vld [vmem:[#allocation8 + $0x2d4] sm:$0xf]  ;;  %v4387_v5 = vld [vmem:[#allocation8 + $0x2ac] sm:$0xf] }
  0x5b   :  { %v3219_v51 = vld [vmem:[#allocation8 + $0x1a4] sm:$0xf0]  ;;  %v3359_v6 = vld [vmem:[#allocation8 + $0x2bc] sm:$0xf0]  ;;  %v4432_v11 = vld [vmem:[#allocation8 + $0x414] sm:$0xf] }
  0x5c   :  { %2173 = vmatpush.bf16.msrb.mxu0 %v3878_v46  ;;  %v3379_v53 = vld [vmem:[#allocation8 + $0x2e4] sm:$0xf0] }
  0x5d   :  { %2186 = vmatpush.bf16.msrb.mxu1 %v4038_v54  ;;  %v3539_v12 = vld [vmem:[#allocation8 + $0x424] sm:$0xf0] }
  0x5e   :  { %2161 = vmatpush.bf16.msra.mxu3 %v3698_v49  ;;  %2199 = vmatpush.bf16.msrb.mxu2 %v3082_v56  ;;  %v3462_v56 = vor.u32 %v4412_v44, %v3459_v45  ;;  %v3242_v45 = vor.u32 %v4357_v13, %v3239_v32  ;;  %v3519_v13 = vld [vmem:[#allocation8 + $0x3fc] sm:$0xf0] }
  0x60   :  { %2174 = vmatpush.bf16.msrb.mxu0 %v3858_v50  ;;  %v3302_v50 = vor.u32 %v4372_v41, %v3299_v42  ;;  %v4442_v41 = vld [vmem:[#allocation8 + $0x464] sm:$0xf]  ;;  %v3579_v42 = vld [vmem:[#allocation8 + $0x474] sm:$0xf0] }
  0x61   :  { %2187 = vmatpush.bf16.msrb.mxu1 %v4018_v2 }
  0x62   :  { %2162 = vmatpush.bf16.msra.mxu3 %v3678_v59  ;;  %2200 = vmatpush.bf16.msrb.mxu2 %v3062_v4  ;;  %v3279_v59 = vld [vmem:[#allocation8 + $0x21c] sm:$0xf0] }
  0x63   :  { %v3282_v4 = vor.u32 %v4367_v58, %v3279_v59  ;;  %v4437_v58 = vld [vmem:[#allocation8 + $0x43c] sm:$0xf]  ;;  %v3559_v59 = vld [vmem:[#allocation8 + $0x44c] sm:$0xf0] }
  0x64   :  { %2175 = vmatpush.bf16.msrb.mxu0 %v3838_v62  ;;  %v3439_v62 = vld [vmem:[#allocation8 + $0x35c] sm:$0xf0] }
  0x65   :  { %2188 = vmatpush.bf16.msrb.mxu1 %v3998_v14  ;;  %v3442_v9 = vor.u32 %v4407_v61, %v3439_v62  ;;  %v146_v14 = vperm.slane %v4932_v24, 5  ;;  %v3382_v62 = vor.u32 %v4392_v52, %v3379_v53  ;;  %v4340_v52 = vld [vmem:[#allocation8 + $0x130] sm:$0xf0] }
  0x66   :  { %2163 = vmatpush.bf16.msra.mxu3 %v3658_v8  ;;  %2201 = vmatpush.bf16.msrb.mxu2 %v3042_v17 }
  0x68   :  { %2176 = vmatpush.bf16.msrb.mxu0 %v3818_v10  ;;  %v3779_v10 = vld [vmem:[#allocation8 + $0x604] sm:$0xf0] }
  0x69   :  { %2189 = vmatpush.bf16.msrb.mxu1 %v3978_v20  ;;  %v3782_v20 = vor.u32 %v4492_v7, %v3779_v10  ;;  %v3562_v7 = vor.u32 %v4437_v58, %v3559_v59  ;;  %v3919_v58 = vld [vmem:[#allocation8 + $0x71c] sm:$0xf0]  ;;  %v4567_v59 = vld [vmem:[#allocation8 + $0x84c] sm:$0xf] }
  0x6a   :  { %2202 = vmatpush.bf16.msrb.mxu2 %v3022_v23  ;;  %v3599_v23 = vld [vmem:[#allocation8 + $0x49c] sm:$0xf0] }
  0xa4   :  { %v204_v27 = vpop.f32.mrf.mxu0  ;;  %v217_v29 = vpop.f32.mrf.mxu1 }
  0xa5   :  { %v205_v28 = vadd.f32 %v204_v27, %v141_v25  ;;  %v218_v31 = vadd.f32 %v217_v29, %v142_v26  ;;  %v4487_v29 = vld [vmem:[#allocation8 + $0x5cc] sm:$0xf] }
  0xa7   :  { %v286_v34 = vmax.f32 %v205_v28, 0.0  ;;  %v287_v35 = vmax.f32 %v218_v31, 0.0  ;;  %v3422_v28 = vor.u32 %v4402_v15, %v3419_v16  ;;  %v3362_v16 = vor.u32 %v4387_v5, %v3359_v6  ;;  %v3305_v5 = vld [vmem:[#allocation8 + $0x238] sm:$0xf]  ;;  %v4375_v6 = vld [vmem:[#allocation8 + $0x248] sm:$0xf0] }
  0xa9   :  { %v4937_v38 = vpack.c.bf16 %v286_v34, %v286_v34  ;;  %v4940_v43 = vpack.c.bf16 %v287_v35, %v287_v35  ;;  %v3399_v34 = vld [vmem:[#allocation8 + $0x30c] sm:$0xf0] }
  0xab   :  { %v230_v46 = vpop.f32.mrf.mxu2  ;;  %2112 = vmatmul.bf16.vlgmr.msrb.gmra.mxu3 %v4937_v38  ;;  %2125 = vmatmul.bf16.vlgmr.msra.gmra.mxu0 %v4940_v43 }
  0xac   :  { %v231_v47 = vadd.f32 %v230_v46, %v143_v36  ;;  %v243_v48 = vpop.f32.mrf.mxu3  ;;  %2208 = vmatpush.bf16.msrb.mxu3 %v3322_v37  ;;  %v206_v49 = vpop.f32.mrf.mxu0  ;;  %2221 = vmatpush.bf16.msra.mxu0 %v3482_v40  ;;  %v3602_v36 = vor.u32 %v4447_v22, %v3599_v23  ;;  %v147_v40 = vperm.slane %v4932_v24, 6  ;;  %v3402_v46 = vor.u32 %v4397_v33, %v3399_v34  ;;  %v4537_v22 = vld [vmem:[#allocation8 + $0x75c] sm:$0xf]  ;;  %v4467_v33 = vld [vmem:[#allocation8 + $0x52c] sm:$0xf] }
  0xad   :  { %v244_v54 = vadd.f32 %v243_v48, %v144_v39  ;;  %v219_v55 = vpop.f32.mrf.mxu1  ;;  %v3762_v39 = vor.u32 %v4487_v29, %v3759_v30  ;;  %v3739_v48 = vld [vmem:[#allocation8 + $0x5b4] sm:$0xf0]  ;;  %v4352_v49 = vld [vmem:[#allocation8 + $0x194] sm:$0xf]  ;;  %v3582_v24 = vor.u32 %v4442_v41, %v3579_v42  ;;  %v3542_v23 = vor.u32 %v4432_v11, %v3539_v12  ;;  %v4427_v30 = vld [vmem:[#allocation8 + $0x3ec] sm:$0xf] }
  0xae   :  { %v288_v60 = vmax.f32 %v231_v47, 0.0  ;;  %v4482_v47 = vld [vmem:[#allocation8 + $0x5a4] sm:$0xf]  ;;  %v3222_v61 = vor.u32 %v4352_v49, %v3219_v51  ;;  %v3679_v34 = vld [vmem:[#allocation8 + $0x53c] sm:$0xf0] }
  0xaf   :  { %v289_v63 = vmax.f32 %v244_v54, 0.0  ;;  %v4572_v41 = vld [vmem:[#allocation8 + $0x874] sm:$0xf]  ;;  %v4099_v42 = vld [vmem:[#allocation8 + $0x884] sm:$0xf0] }
  0xb0   :  { %v4945_v2 = vpack.c.bf16 %v288_v60, %v288_v60  ;;  %2209 = vmatpush.bf16.msrb.mxu3 %v3302_v50  ;;  %2222 = vmatpush.bf16.msra.mxu0 %v3462_v56  ;;  %v3742_v56 = vor.u32 %v4482_v47, %v3739_v48  ;;  %v4477_v60 = vld [vmem:[#allocation8 + $0x57c] sm:$0xf]  ;;  %v3499_v47 = vld [vmem:[#allocation8 + $0x3d4] sm:$0xf0]  ;;  %v4462_v48 = vld [vmem:[#allocation8 + $0x504] sm:$0xf] }
  0xb1   :  { %v4947_v8 = vpack.c.bf16 %v289_v63, %v289_v63  ;;  %v3719_v63 = vld [vmem:[#allocation8 + $0x58c] sm:$0xf0]  ;;  %v3659_v49 = vld [vmem:[#allocation8 + $0x514] sm:$0xf0]  ;;  %v3165_v51 = vld [vmem:[#allocation8 + $0x120] sm:$0xf] }
  0xb2   :  { %2138 = vmatmul.bf16.vlgmr.msra.gmra.mxu1 %v4945_v2  ;;  %v3722_v10 = vor.u32 %v4477_v60, %v3719_v63  ;;  %v4079_v60 = vld [vmem:[#allocation8 + $0x85c] sm:$0xf0]  ;;  %v4562_v11 = vld [vmem:[#allocation8 + $0x824] sm:$0xf]  ;;  %v4059_v12 = vld [vmem:[#allocation8 + $0x834] sm:$0xf0] }
  0xb3   :  { %2151 = vmatmul.bf16.vlgmr.msra.gmra.mxu2 %v4947_v8  ;;  %2234 = vmatpush.bf16.msra.mxu1 %v3642_v0  ;;  %v232_v17 = vpop.f32.mrf.mxu2  ;;  %v4347_v0 = vld [vmem:[#allocation8 + $0x16c] sm:$0xf] }
  0xb4   :  { %2247 = vmatpush.bf16.msra.mxu2 %v3802_v3  ;;  %2210 = vmatpush.bf16.msrb.mxu3 %v3282_v4  ;;  %v256_v19 = vpop.f32.mrf.mxu0  ;;  %v245_v25 = vpop.f32.mrf.mxu3  ;;  %v3699_v17 = vld [vmem:[#allocation8 + $0x564] sm:$0xf0] }
  0xb5   :  { %2223 = vmatpush.bf16.msra.mxu0 %v3442_v9  ;;  %v257_v26 = vadd.f32 %v256_v19, %v145_v1  ;;  %v269_v27 = vpop.f32.mrf.mxu1  ;;  %v3199_v1 = vld [vmem:[#allocation8 + $0x17c] sm:$0xf0]  ;;  %v3179_v19 = vld [vmem:[#allocation8 + $0x154] sm:$0xf0]  ;;  %v3959_v25 = vld [vmem:[#allocation8 + $0x76c] sm:$0xf0] }
  0xb6   :  { %v270_v31 = vadd.f32 %v269_v27, %v146_v14  ;;  %v4472_v14 = vld [vmem:[#allocation8 + $0x554] sm:$0xf]  ;;  %v3202_v15 = vor.u32 %v4347_v0, %v3199_v1  ;;  %v4119_v27 = vld [vmem:[#allocation8 + $0x8ac] sm:$0xf0]  ;;  %v3145_v0 = vld [vmem:[#allocation8 + $0xf8] sm:$0xf] }
  0xb7   :  { %v290_v35 = vmax.f32 %v257_v26, 0.0  ;;  %2235 = vmatpush.bf16.msra.mxu1 %v3622_v18  ;;  %v4342_v18 = vld [vmem:[#allocation8 + $0x144] sm:$0xf]  ;;  %v4577_v26 = vld [vmem:[#allocation8 + $0x89c] sm:$0xf]  ;;  %v3702_v29 = vor.u32 %v4472_v14, %v3699_v17 }
  0xb8   :  { %v291_v37 = vmax.f32 %v270_v31, 0.0  ;;  %2248 = vmatpush.bf16.msra.mxu2 %v3782_v20  ;;  %2211 = vmatpush.bf16.msrb.mxu3 %v3262_v21  ;;  %v4382_v20 = vld [vmem:[#allocation8 + $0x284] sm:$0xf]  ;;  %v3339_v21 = vld [vmem:[#allocation8 + $0x294] sm:$0xf0]  ;;  %v3182_v31 = vor.u32 %v4342_v18, %v3179_v19  ;;  %v4062_v19 = vor.u32 %v4562_v11, %v4059_v12 }
  0xb9   :  { %v4953_v44 = vpack.c.bf16 %v290_v35, %v290_v35  ;;  %2224 = vmatpush.bf16.msra.mxu0 %v3422_v28  ;;  %v3342_v32 = vor.u32 %v4382_v20, %v3339_v21  ;;  %v3962_v35 = vor.u32 %v4537_v22, %v3959_v25  ;;  %v4335_v1 = vld [vmem:[#allocation8 + $0x108] sm:$0xf0]  ;;  %v4330_v17 = vld [vmem:[#allocation8 + $0xe0] sm:$0xf0]  ;;  %v3285_v20 = vld [vmem:[#allocation8 + $0x210] sm:$0xf] }
  0xba   :  { %v4955_v50 = vpack.c.bf16 %v291_v37, %v291_v37  ;;  %v4532_v37 = vld [vmem:[#allocation8 + $0x734] sm:$0xf]  ;;  %v3146_v14 = vor.u32 %v4335_v1, %v3145_v0  ;;  %v4370_v21 = vld [vmem:[#allocation8 + $0x220] sm:$0xf0]  ;;  %v4517_v22 = vld [vmem:[#allocation8 + $0x6bc] sm:$0xf] }
  0xbb   :  { %2236 = vmatpush.bf16.msra.mxu1 %v3602_v36  ;;  %v282_v54 = vpop.f32.mrf.mxu2  ;;  %2164 = vmatmul.bf16.vlgmr.msra.gmra.mxu3 %v4953_v44  ;;  %v4122_v36 = vor.u32 %v4577_v26, %v4119_v27  ;;  %v4557_v25 = vld [vmem:[#allocation8 + $0x7fc] sm:$0xf]  ;;  %v4039_v26 = vld [vmem:[#allocation8 + $0x80c] sm:$0xf0]  ;;  %v3979_v0 = vld [vmem:[#allocation8 + $0x794] sm:$0xf0] }
  0xbc   :  { %2249 = vmatpush.bf16.msra.mxu2 %v3762_v39  ;;  %v283_v55 = vadd.f32 %v282_v54, %v147_v40  ;;  %2177 = vmatmul.bf16.vlgmr.msrb.gmra.mxu0 %v4955_v50  ;;  %v258_v57 = vpop.f32.mrf.mxu0  ;;  %v3522_v39 = vor.u32 %v4427_v30, %v3519_v13  ;;  %v3939_v40 = vld [vmem:[#allocation8 + $0x744] sm:$0xf0]  ;;  %v4102_v54 = vor.u32 %v4572_v41, %v4099_v42  ;;  %v4325_v30 = vld [vmem:[#allocation8 + $0xb8] sm:$0xf0]  ;;  %v3085_v41 = vld [vmem:[#allocation8 + $0x80] sm:$0xf] }
  0xbd   :  { %2212 = vmatpush.bf16.msrb.mxu3 %v3242_v45  ;;  %2225 = vmatpush.bf16.msra.mxu0 %v3402_v46  ;;  %v271_v3 = vpop.f32.mrf.mxu1  ;;  %v3682_v45 = vor.u32 %v4467_v33, %v3679_v34  ;;  %v4422_v46 = vld [vmem:[#allocation8 + $0x3c4] sm:$0xf]  ;;  %v3942_v53 = vor.u32 %v4532_v37, %v3939_v40  ;;  %v4365_v33 = vld [vmem:[#allocation8 + $0x1f8] sm:$0xf0]  ;;  %v4512_v34 = vld [vmem:[#allocation8 + $0x694] sm:$0xf] }
  0xbe   :  { %v292_v4 = vmax.f32 %v283_v55, 0.0  ;;  %v4380_v55 = vld [vmem:[#allocation8 + $0x270] sm:$0xf0]  ;;  %v3502_v57 = vor.u32 %v4422_v46, %v3499_v47  ;;  %v4019_v37 = vld [vmem:[#allocation8 + $0x7e4] sm:$0xf0] }
  0xbf   :  { %2237 = vmatpush.bf16.msra.mxu1 %v3582_v24  ;;  %v3325_v24 = vld [vmem:[#allocation8 + $0x260] sm:$0xf]  ;;  %v4320_v42 = vld [vmem:[#allocation8 + $0x90] sm:$0xf0]  ;;  %v4310_v11 = vld [vmem:[#allocation8 + $0x40] sm:$0xf0] }
  0xc0   :  { %v4959_v9 = vpack.c.bf16 %v292_v4, %v292_v4  ;;  %2250 = vmatpush.bf16.msra.mxu2 %v3742_v56  ;;  %v4527_v56 = vld [vmem:[#allocation8 + $0x70c] sm:$0xf]  ;;  %v3326_v63 = vor.u32 %v4380_v55, %v3325_v24  ;;  %v4082_v4 = vor.u32 %v4567_v59, %v4079_v60  ;;  %v3245_v47 = vld [vmem:[#allocation8 + $0x1c0] sm:$0xf]  ;;  %v3065_v55 = vld [vmem:[#allocation8 + $0x58] sm:$0xf] }
  0xc1   :  { %2213 = vmatpush.bf16.msrb.mxu3 %v3222_v61  ;;  %2226 = vmatpush.bf16.msra.mxu0 %v3382_v62  ;;  %v3662_v61 = vor.u32 %v4462_v48, %v3659_v49  ;;  %v3166_v62 = vor.u32 %v4340_v52, %v3165_v51  ;;  %v3922_v3 = vor.u32 %v4527_v56, %v3919_v58  ;;  %v4360_v48 = vld [vmem:[#allocation8 + $0x1d0] sm:$0xf0]  ;;  %v4507_v49 = vld [vmem:[#allocation8 + $0x66c] sm:$0xf]  ;;  %v3839_v51 = vld [vmem:[#allocation8 + $0x67c] sm:$0xf0] }
  0xc2   :  { %2190 = vmatmul.bf16.vlgmr.msrb.gmra.mxu1 %v4959_v9  ;;  %v4547_v52 = vld [vmem:[#allocation8 + $0x7ac] sm:$0xf]  ;;  %v3246_v24 = vor.u32 %v4360_v48, %v3245_v47  ;;  %v3842_v58 = vor.u32 %v4507_v49, %v3839_v51  ;;  %v3485_v1 = vld [vmem:[#allocation8 + $0x3a0] sm:$0xf]  ;;  %v3945_v49 = vld [vmem:[#allocation8 + $0x738] sm:$0xf] }
  0xc3   :  { %2203 = vmatmul.bf16.vlgmr.msrb.gmra.mxu2 %v4937_v38  ;;  %2238 = vmatpush.bf16.msra.mxu1 %v3562_v7  ;;  %v284_v28 = vpop.f32.mrf.mxu2  ;;  %v4522_v7 = vld [vmem:[#allocation8 + $0x6e4] sm:$0xf]  ;;  %v4315_v56 = vld [vmem:[#allocation8 + $0x68] sm:$0xf0] }
  0xc4   :  { %2251 = vmatpush.bf16.msra.mxu2 %v3722_v10  ;;  %v3899_v10 = vld [vmem:[#allocation8 + $0x6f4] sm:$0xf0]  ;;  %v3286_v28 = vor.u32 %v4370_v21, %v3285_v20  ;;  %v4355_v60 = vld [vmem:[#allocation8 + $0x1a8] sm:$0xf0] }
  0xc5   :  { %2214 = vmatpush.bf16.msrb.mxu3 %v3202_v15  ;;  %2227 = vmatpush.bf16.msra.mxu0 %v3362_v16  ;;  %v3306_v15 = vor.u32 %v4375_v6, %v3305_v5  ;;  %v3125_v16 = vld [vmem:[#allocation8 + $0xd0] sm:$0xf]  ;;  %v3902_v18 = vor.u32 %v4522_v7, %v3899_v10  ;;  %v3645_v5 = vld [vmem:[#allocation8 + $0x4e0] sm:$0xf]  ;;  %v4460_v6 = vld [vmem:[#allocation8 + $0x4f0] sm:$0xf0] }
  0xc6   :  { %v3126_v27 = vor.u32 %v4330_v17, %v3125_v16  ;;  %v3045_v10 = vld [vmem:[#allocation8 + $0x30] sm:$0xf]  ;;  %v4350_v16 = vld [vmem:[#allocation8 + $0x180] sm:$0xf0]  ;;  %v4415_v21 = vld [vmem:[#allocation8 + $0x388] sm:$0xf0] }
  0xc7   :  { %2239 = vmatpush.bf16.msra.mxu1 %v3542_v23  ;;  %v3879_v23 = vld [vmem:[#allocation8 + $0x6cc] sm:$0xf0]  ;;  %v3046_v20 = vor.u32 %v4310_v11, %v3045_v10  ;;  %v4495_v47 = vld [vmem:[#allocation8 + $0x608] sm:$0xf0]  ;;  %v4485_v10 = vld [vmem:[#allocation8 + $0x5b8] sm:$0xf0] }
  0xc8   :  { %2252 = vmatpush.bf16.msra.mxu2 %v3702_v29  ;;  %v3105_v29 = vld [vmem:[#allocation8 + $0xa8] sm:$0xf]  ;;  %v3882_v13 = vor.u32 %v4517_v22, %v3879_v23  ;;  %v3625_v22 = vld [vmem:[#allocation8 + $0x4b8] sm:$0xf]  ;;  %v4455_v23 = vld [vmem:[#allocation8 + $0x4c8] sm:$0xf0] }
  0xc9   :  { %2215 = vmatpush.bf16.msrb.mxu3 %v3182_v31  ;;  %2228 = vmatpush.bf16.msra.mxu0 %v3342_v32  ;;  %v4042_v31 = vor.u32 %v4557_v25, %v4039_v26  ;;  %v3265_v32 = vld [vmem:[#allocation8 + $0x1e8] sm:$0xf]  ;;  %v4535_v51 = vld [vmem:[#allocation8 + $0x748] sm:$0xf0] }
  0xca   :  { %v3266_v40 = vor.u32 %v4365_v33, %v3265_v32  ;;  %v3025_v26 = vld [vmem:[#allocation8 + $0x8] sm:$0xf]  ;;  %v3626_v32 = vor.u32 %v4455_v23, %v3625_v22  ;;  %v3965_v33 = vld [vmem:[#allocation8 + $0x760] sm:$0xf]  ;;  %v4480_v23 = vld [vmem:[#allocation8 + $0x590] sm:$0xf0] }
  0xcb   :  { %2240 = vmatpush.bf16.msra.mxu1 %v3522_v39  ;;  %v3106_v39 = vor.u32 %v4325_v30, %v3105_v29  ;;  %v4345_v29 = vld [vmem:[#allocation8 + $0x158] sm:$0xf0]  ;;  %v3805_v30 = vld [vmem:[#allocation8 + $0x620] sm:$0xf] }
  0xcc   :  { %2253 = vmatpush.bf16.msra.mxu2 %v3682_v45  ;;  %2216 = vmatmul.bf16.vlgmr.msrb.gmra.mxu3 %v4940_v43  ;;  %v3725_v22 = vld [vmem:[#allocation8 + $0x580] sm:$0xf] }
  0xcd   :  { %2260 = vmatpush.bf16.msra.mxu3 %v3962_v35  ;;  %2273 = vmatpush.bf16.msrb.mxu0 %v4122_v36  ;;  %v3859_v35 = vld [vmem:[#allocation8 + $0x6a4] sm:$0xf0]  ;;  %v4552_v36 = vld [vmem:[#allocation8 + $0x7d4] sm:$0xf] }
  0xce   :  { %2229 = vmatmul.bf16.vlgmr.msra.gmra.mxu0 %v4945_v2  ;;  %v3862_v45 = vor.u32 %v4512_v34, %v3859_v35  ;;  %v4022_v46 = vor.u32 %v4552_v36, %v4019_v37  ;;  %v4540_v34 = vld [vmem:[#allocation8 + $0x770] sm:$0xf0]  ;;  %v3445_v36 = vld [vmem:[#allocation8 + $0x350] sm:$0xf]  ;;  %v4410_v37 = vld [vmem:[#allocation8 + $0x360] sm:$0xf0] }
  0xcf   :  { %2241 = vmatpush.bf16.msra.mxu1 %v3502_v57  ;;  %v3225_v57 = vld [vmem:[#allocation8 + $0x198] sm:$0xf]  ;;  %v3446_v48 = vor.u32 %v4410_v37, %v3445_v36 }
  0xd0   :  { %2254 = vmatpush.bf16.msra.mxu2 %v3662_v61  ;;  %v4502_v61 = vld [vmem:[#allocation8 + $0x644] sm:$0xf]  ;;  %v3226_v7 = vor.u32 %v4355_v60, %v3225_v57  ;;  %v3946_v57 = vor.u32 %v4535_v51, %v3945_v49  ;;  %v3865_v37 = vld [vmem:[#allocation8 + $0x698] sm:$0xf]  ;;  %v4580_v49 = vld [vmem:[#allocation8 + $0x8b0] sm:$0xf0] }
  0xd1   :  { %2261 = vmatpush.bf16.msra.mxu3 %v3942_v53  ;;  %2274 = vmatpush.bf16.msrb.mxu0 %v4102_v54  ;;  %v3999_v53 = vld [vmem:[#allocation8 + $0x7bc] sm:$0xf0]  ;;  %v3086_v54 = vor.u32 %v4320_v42, %v3085_v41  ;;  %v3605_v41 = vld [vmem:[#allocation8 + $0x490] sm:$0xf]  ;;  %v4450_v42 = vld [vmem:[#allocation8 + $0x4a0] sm:$0xf0] }
  0xd2   :  { %2242 = vmatmul.bf16.vlgmr.msra.gmra.mxu1 %v4947_v8  ;;  %v4002_v59 = vor.u32 %v4547_v52, %v3999_v53  ;;  %v3606_v52 = vor.u32 %v4450_v42, %v3605_v41  ;;  %v3425_v53 = vld [vmem:[#allocation8 + $0x328] sm:$0xf]  ;;  %v4385_v42 = vld [vmem:[#allocation8 + $0x298] sm:$0xf0]  ;;  %v4338_v51 = vld [vmem:[#allocation8 + $0x124] sm:$0xf] }
  0xd3   :  { %2286 = vmatpush.bf16.msrb.mxu1 %v3166_v62  ;;  %2255 = vmatmul.bf16.vlgmr.msra.gmra.mxu2 %v4953_v44  ;;  %v3819_v62 = vld [vmem:[#allocation8 + $0x654] sm:$0xf0] }
  0xd4   :  { %2299 = vmatpush.bf16.msrb.mxu2 %v3326_v63  ;;  %v4542_v63 = vld [vmem:[#allocation8 + $0x784] sm:$0xf]  ;;  %v3822_v12 = vor.u32 %v4502_v61, %v3819_v62  ;;  %v3925_v61 = vld [vmem:[#allocation8 + $0x710] sm:$0xf] }
  0xd5   :  { %2262 = vmatpush.bf16.msra.mxu3 %v3922_v3  ;;  %2275 = vmatpush.bf16.msrb.mxu0 %v4082_v4  ;;  %v3066_v3 = vor.u32 %v4315_v56, %v3065_v55  ;;  %v4420_v4 = vld [vmem:[#allocation8 + $0x3b0] sm:$0xf0]  ;;  %v3585_v55 = vld [vmem:[#allocation8 + $0x468] sm:$0xf]  ;;  %v4445_v56 = vld [vmem:[#allocation8 + $0x478] sm:$0xf0] }
  0xd6   :  { %v3486_v17 = vor.u32 %v4420_v4, %v3485_v1  ;;  %v4530_v62 = vld [vmem:[#allocation8 + $0x720] sm:$0xf0]  ;;  %v4400_v1 = vld [vmem:[#allocation8 + $0x310] sm:$0xf0]  ;;  %v3565_v4 = vld [vmem:[#allocation8 + $0x440] sm:$0xf] }
  0xd7   :  { %2287 = vmatpush.bf16.msrb.mxu1 %v3146_v14  ;;  %v3982_v14 = vor.u32 %v4542_v63, %v3979_v0  ;;  %v3586_v63 = vor.u32 %v4445_v56, %v3585_v55  ;;  %v3405_v0 = vld [vmem:[#allocation8 + $0x300] sm:$0xf]  ;;  %v3845_v56 = vld [vmem:[#allocation8 + $0x670] sm:$0xf] }
  0xd8   :  { %2300 = vmatpush.bf16.msrb.mxu2 %v3306_v15  ;;  %v3205_v15 = vld [vmem:[#allocation8 + $0x170] sm:$0xf]  ;;  %v3406_v11 = vor.u32 %v4400_v1, %v3405_v0  ;;  %v4333_v0 = vld [vmem:[#allocation8 + $0xfc] sm:$0xf] }
  0xd9   :  { %2263 = vmatpush.bf16.msra.mxu3 %v3902_v18  ;;  %2276 = vmatpush.bf16.msrb.mxu0 %v4062_v19  ;;  %v3646_v18 = vor.u32 %v4460_v6, %v3645_v5  ;;  %v3465_v19 = vld [vmem:[#allocation8 + $0x378] sm:$0xf]  ;;  %v3206_v25 = vor.u32 %v4350_v16, %v3205_v15  ;;  %v4440_v5 = vld [vmem:[#allocation8 + $0x450] sm:$0xf0]  ;;  %v3926_v6 = vor.u32 %v4530_v62, %v3925_v61  ;;  %v3147_v1 = vld [vmem:[#allocation8 + $0x10c] sm:$0xf0] }
  0xda   :  { %v3566_v15 = vor.u32 %v4440_v5, %v3565_v4  ;;  %v3385_v16 = vld [vmem:[#allocation8 + $0x2d8] sm:$0xf]  ;;  %v3665_v4 = vld [vmem:[#allocation8 + $0x508] sm:$0xf]  ;;  %v4465_v5 = vld [vmem:[#allocation8 + $0x518] sm:$0xf0] }
  0xdb   :  { %2288 = vmatpush.bf16.msrb.mxu1 %v3126_v27  ;;  %v4305_v27 = vld [vmem:[#allocation8 + $0x18] sm:$0xf0] }
  0xdc   :  { %2301 = vmatpush.bf16.msrb.mxu2 %v3286_v28  ;;  %v3185_v28 = vld [vmem:[#allocation8 + $0x148] sm:$0xf]  ;;  %v3026_v35 = vor.u32 %v4305_v27, %v3025_v26  ;;  %v3885_v26 = vld [vmem:[#allocation8 + $0x6c0] sm:$0xf]  ;;  %v4520_v27 = vld [vmem:[#allocation8 + $0x6d0] sm:$0xf0] }
  0xdd   :  { %2264 = vmatpush.bf16.msra.mxu3 %v3882_v13  ;;  %2277 = vmatpush.bf16.msrb.mxu0 %v4042_v31  ;;  %v4500_v13 = vld [vmem:[#allocation8 + $0x630] sm:$0xf0]  ;;  %v3466_v31 = vor.u32 %v4415_v21, %v3465_v19  ;;  %v3545_v19 = vld [vmem:[#allocation8 + $0x418] sm:$0xf] }
  0xdf   :  { %2289 = vmatpush.bf16.msrb.mxu1 %v3106_v39  ;;  %v3186_v39 = vor.u32 %v4345_v29, %v3185_v28  ;;  %v3365_v29 = vld [vmem:[#allocation8 + $0x2b0] sm:$0xf] }
  0xe0   :  { %2302 = vmatpush.bf16.msrb.mxu2 %v3266_v40  ;;  %v3806_v40 = vor.u32 %v4500_v13, %v3805_v30  ;;  %v4390_v30 = vld [vmem:[#allocation8 + $0x2c0] sm:$0xf0]  ;;  %v3726_v13 = vor.u32 %v4480_v23, %v3725_v22  ;;  %v4328_v22 = vld [vmem:[#allocation8 + $0xd4] sm:$0xf]  ;;  %v3127_v23 = vld [vmem:[#allocation8 + $0xe4] sm:$0xf0] }
  0xe1   :  { %2265 = vmatpush.bf16.msra.mxu3 %v3862_v45  ;;  %2278 = vmatpush.bf16.msrb.mxu0 %v4022_v46  ;;  %v3966_v45 = vor.u32 %v4540_v34, %v3965_v33  ;;  %v3785_v46 = vld [vmem:[#allocation8 + $0x5f8] sm:$0xf]  ;;  %v3886_v33 = vor.u32 %v4520_v27, %v3885_v26  ;;  %v3366_v36 = vor.u32 %v4390_v30, %v3365_v29  ;;  %v4373_v26 = vld [vmem:[#allocation8 + $0x23c] sm:$0xf]  ;;  %v3307_v27 = vld [vmem:[#allocation8 + $0x24c] sm:$0xf0] }
  0xe2   :  { %v3705_v34 = vld [vmem:[#allocation8 + $0x558] sm:$0xf]  ;;  %v4413_v29 = vld [vmem:[#allocation8 + $0x37c] sm:$0xf]  ;;  %v3467_v30 = vld [vmem:[#allocation8 + $0x38c] sm:$0xf0] }
  0xe3   :  { %2290 = vmatpush.bf16.msrb.mxu1 %v3086_v54  ;;  %v4405_v54 = vld [vmem:[#allocation8 + $0x338] sm:$0xf0] }
  0xe4   :  { %2303 = vmatpush.bf16.msrb.mxu2 %v3246_v24  ;;  %v3786_v24 = vor.u32 %v4495_v47, %v3785_v46  ;;  %v3426_v60 = vor.u32 %v4405_v54, %v3425_v53  ;;  %v4425_v46 = vld [vmem:[#allocation8 + $0x3d8] sm:$0xf0]  ;;  %v3167_v53 = vld [vmem:[#allocation8 + $0x134] sm:$0xf0]  ;;  %v3685_v54 = vld [vmem:[#allocation8 + $0x530] sm:$0xf] }
  0xe5   :  { %2266 = vmatpush.bf16.msra.mxu3 %v3842_v58  ;;  %2279 = vmatpush.bf16.msrb.mxu0 %v4002_v59  ;;  %v3765_v58 = vld [vmem:[#allocation8 + $0x5d0] sm:$0xf]  ;;  %v4490_v59 = vld [vmem:[#allocation8 + $0x5e0] sm:$0xf0]  ;;  %v3170_v61 = vor.u32 %v4338_v51, %v3167_v53  ;;  %v3087_v51 = vld [vmem:[#allocation8 + $0x94] sm:$0xf0] }
  0xe6   :  { %v4363_v53 = vld [vmem:[#allocation8 + $0x1ec] sm:$0xf] }
  0xe7   :  { %2291 = vmatpush.bf16.msrb.mxu1 %v3066_v3  ;;  %v3766_v3 = vor.u32 %v4490_v59, %v3765_v58 }
  0xe8   :  { %2304 = vmatpush.bf16.msrb.mxu2 %v3226_v7  ;;  %v3745_v7 = vld [vmem:[#allocation8 + $0x5a8] sm:$0xf] }
  0xe9   :  { %2267 = vmatpush.bf16.msra.mxu3 %v3822_v12  ;;  %2280 = vmatpush.bf16.msrb.mxu0 %v3982_v14  ;;  %v3905_v12 = vld [vmem:[#allocation8 + $0x6e8] sm:$0xf]  ;;  %v4525_v14 = vld [vmem:[#allocation8 + $0x6f8] sm:$0xf0] }
  0xea   :  { %v3906_v21 = vor.u32 %v4525_v14, %v3905_v12  ;;  %v4418_v14 = vld [vmem:[#allocation8 + $0x3a4] sm:$0xf] }
  0xeb   :  { %2292 = vmatpush.bf16.msrb.mxu1 %v3046_v20  ;;  %v4435_v20 = vld [vmem:[#allocation8 + $0x428] sm:$0xf0] }
  0xec   :  { %2305 = vmatpush.bf16.msrb.mxu2 %v3206_v25  ;;  %2268 = vmatmul.bf16.vlgmr.msra.gmra.mxu3 %v4955_v50  ;;  %v3546_v28 = vor.u32 %v4435_v20, %v3545_v19  ;;  %v4570_v19 = vld [vmem:[#allocation8 + $0x860] sm:$0xf0] }
  0xed   :  { %2312 = vmatpush.bf16.msrb.mxu3 %v3486_v17  ;;  %2325 = vmatpush.bf16.msra.mxu0 %v3646_v18  ;;  %v4395_v17 = vld [vmem:[#allocation8 + $0x2e8] sm:$0xf0]  ;;  %v3746_v18 = vor.u32 %v4485_v10, %v3745_v7  ;;  %v4505_v7 = vld [vmem:[#allocation8 + $0x658] sm:$0xf0]  ;;  %v4378_v10 = vld [vmem:[#allocation8 + $0x264] sm:$0xf] }
  0xee   :  { %2281 = vmatmul.bf16.vlgmr.msrb.gmra.mxu0 %v4959_v9  ;;  %v3386_v25 = vor.u32 %v4395_v17, %v3385_v16  ;;  %v3150_v16 = vor.u32 %v4333_v0, %v3147_v1  ;;  %v3666_v17 = vor.u32 %v4465_v5, %v3665_v4  ;;  %v4358_v0 = vld [vmem:[#allocation8 + $0x1c4] sm:$0xf]  ;;  %v3247_v1 = vld [vmem:[#allocation8 + $0x1d4] sm:$0xf0] }
  0xef   :  { %2293 = vmatpush.bf16.msrb.mxu1 %v3026_v35  ;;  %v4475_v35 = vld [vmem:[#allocation8 + $0x568] sm:$0xf0]  ;;  %v4398_v4 = vld [vmem:[#allocation8 + $0x304] sm:$0xf]  ;;  %v3407_v5 = vld [vmem:[#allocation8 + $0x314] sm:$0xf0] }
  0xf0   :  { %2306 = vmatpush.bf16.msrb.mxu2 %v3186_v39  ;;  %v4515_v39 = vld [vmem:[#allocation8 + $0x6a8] sm:$0xf0]  ;;  %v3706_v47 = vor.u32 %v4475_v35, %v3705_v34  ;;  %v3107_v35 = vld [vmem:[#allocation8 + $0xbc] sm:$0xf0] }
  0xf1   :  { %2313 = vmatpush.bf16.msrb.mxu3 %v3466_v31  ;;  %2326 = vmatpush.bf16.msra.mxu0 %v3626_v32  ;;  %v3525_v31 = vld [vmem:[#allocation8 + $0x3f0] sm:$0xf]  ;;  %v4430_v32 = vld [vmem:[#allocation8 + $0x400] sm:$0xf0]  ;;  %v4323_v34 = vld [vmem:[#allocation8 + $0xac] sm:$0xf] }
  0xf2   :  { %2294 = vmatmul.bf16.vlgmr.msrb.gmra.mxu1 %v4937_v38  ;;  %v3526_v41 = vor.u32 %v4430_v32, %v3525_v31  ;;  %v4065_v31 = vld [vmem:[#allocation8 + $0x828] sm:$0xf]  ;;  %v4565_v32 = vld [vmem:[#allocation8 + $0x838] sm:$0xf0] }
  0xf3   :  { %2338 = vmatpush.bf16.msra.mxu1 %v3806_v40  ;;  %2307 = vmatmul.bf16.vlgmr.msrb.gmra.mxu2 %v4940_v43  ;;  %v3345_v40 = vld [vmem:[#allocation8 + $0x288] sm:$0xf] }
  0xf4   :  { %2351 = vmatpush.bf16.msra.mxu2 %v3966_v45  ;;  %v3505_v45 = vld [vmem:[#allocation8 + $0x3c8] sm:$0xf]  ;;  %v3346_v55 = vor.u32 %v4385_v42, %v3345_v40  ;;  %v4066_v40 = vor.u32 %v4565_v32, %v4065_v31  ;;  %v3807_v31 = vld [vmem:[#allocation8 + $0x634] sm:$0xf0]  ;;  %v4348_v32 = vld [vmem:[#allocation8 + $0x174] sm:$0xf] }
  0xf5   :  { %2314 = vmatpush.bf16.msrb.mxu3 %v3446_v48  ;;  %2327 = vmatpush.bf16.msra.mxu0 %v3606_v52  ;;  %v4125_v48 = vld [vmem:[#allocation8 + $0x8a0] sm:$0xf]  ;;  %v3866_v52 = vor.u32 %v4515_v39, %v3865_v37  ;;  %v3506_v58 = vor.u32 %v4425_v46, %v3505_v45  ;;  %v4368_v37 = vld [vmem:[#allocation8 + $0x214] sm:$0xf]  ;;  %v3287_v39 = vld [vmem:[#allocation8 + $0x224] sm:$0xf0]  ;;  %v3110_v45 = vor.u32 %v4323_v34, %v3107_v35 }
  0xf6   :  { %v4126_v59 = vor.u32 %v4580_v49, %v4125_v48  ;;  %v3447_v42 = vld [vmem:[#allocation8 + $0x364] sm:$0xf0]  ;;  %v4045_v46 = vld [vmem:[#allocation8 + $0x800] sm:$0xf]  ;;  %v3290_v48 = vor.u32 %v4368_v37, %v3287_v39  ;;  %v4318_v49 = vld [vmem:[#allocation8 + $0x84] sm:$0xf] }
  0xf7   :  { %2339 = vmatpush.bf16.msra.mxu1 %v3786_v24  ;;  %v4470_v24 = vld [vmem:[#allocation8 + $0x540] sm:$0xf0]  ;;  %v4388_v35 = vld [vmem:[#allocation8 + $0x2b4] sm:$0xf] }
  0xf8   :  { %2352 = vmatpush.bf16.msra.mxu2 %v3946_v57  ;;  %v4510_v57 = vld [vmem:[#allocation8 + $0x680] sm:$0xf0]  ;;  %v3686_v62 = vor.u32 %v4470_v24, %v3685_v54  ;;  %v3267_v54 = vld [vmem:[#allocation8 + $0x1fc] sm:$0xf0] }
  0xf9   :  { %2315 = vmatpush.bf16.msrb.mxu3 %v3426_v60  ;;  %2328 = vmatpush.bf16.msra.mxu0 %v3586_v63  ;;  %v4105_v60 = vld [vmem:[#allocation8 + $0x878] sm:$0xf]  ;;  %v4575_v63 = vld [vmem:[#allocation8 + $0x888] sm:$0xf0] }
  0xfa   :  { %v4106_v12 = vor.u32 %v4575_v63, %v4105_v60  ;;  %v3270_v60 = vor.u32 %v4363_v53, %v3267_v54  ;;  %v3347_v53 = vld [vmem:[#allocation8 + $0x29c] sm:$0xf0]  ;;  %v4538_v54 = vld [vmem:[#allocation8 + $0x764] sm:$0xf] }
  0xfb   :  { %2340 = vmatpush.bf16.msra.mxu1 %v3766_v3  ;;  %v3846_v3 = vor.u32 %v4510_v57, %v3845_v56  ;;  %v3427_v56 = vld [vmem:[#allocation8 + $0x33c] sm:$0xf0]  ;;  %v3090_v57 = vor.u32 %v4318_v49, %v3087_v51  ;;  %v4343_v49 = vld [vmem:[#allocation8 + $0x14c] sm:$0xf] }
  0xfc   :  { %2353 = vmatpush.bf16.msra.mxu2 %v3926_v6  ;;  %v3825_v6 = vld [vmem:[#allocation8 + $0x648] sm:$0xf]  ;;  %v3187_v51 = vld [vmem:[#allocation8 + $0x15c] sm:$0xf0] }
  0xfd   :  { %2316 = vmatpush.bf16.msrb.mxu3 %v3406_v11  ;;  %2329 = vmatpush.bf16.msra.mxu0 %v3566_v15  ;;  %v3327_v11 = vld [vmem:[#allocation8 + $0x274] sm:$0xf0]  ;;  %v3826_v20 = vor.u32 %v4505_v7, %v3825_v6  ;;  %v4005_v7 = vld [vmem:[#allocation8 + $0x7b0] sm:$0xf] }
  0xfe   :  { %v3487_v15 = vld [vmem:[#allocation8 + $0x3b4] sm:$0xf0] }
  0xff   :  { %2341 = vmatpush.bf16.msra.mxu1 %v3746_v18  ;;  %v4085_v18 = vld [vmem:[#allocation8 + $0x850] sm:$0xf] }
 0x100   :  { %2354 = vmatpush.bf16.msra.mxu2 %v3906_v21  ;;  %v3330_v21 = vor.u32 %v4378_v10, %v3327_v11  ;;  %v4550_v10 = vld [vmem:[#allocation8 + $0x7c0] sm:$0xf0]  ;;  %v3250_v11 = vor.u32 %v4358_v0, %v3247_v1  ;;  %v4488_v0 = vld [vmem:[#allocation8 + $0x5d4] sm:$0xf]  ;;  %v3767_v1 = vld [vmem:[#allocation8 + $0x5e4] sm:$0xf0] }
 0x101   :  { %2317 = vmatpush.bf16.msrb.mxu3 %v3386_v25  ;;  %2330 = vmatpush.bf16.msra.mxu0 %v3546_v28  ;;  %v3490_v25 = vor.u32 %v4418_v14, %v3487_v15  ;;  %v4086_v28 = vor.u32 %v4570_v19, %v4085_v18  ;;  %v3047_v14 = vld [vmem:[#allocation8 + $0x44] sm:$0xf0]  ;;  %v3410_v15 = vor.u32 %v4398_v4, %v3407_v5  ;;  %v4393_v19 = vld [vmem:[#allocation8 + $0x2dc] sm:$0xf]  ;;  %v3947_v5 = vld [vmem:[#allocation8 + $0x74c] sm:$0xf0] }
 0x102   :  { %v4006_v18 = vor.u32 %v4550_v10, %v4005_v7  ;;  %v4533_v4 = vld [vmem:[#allocation8 + $0x73c] sm:$0xf]  ;;  %v4107_v10 = vld [vmem:[#allocation8 + $0x88c] sm:$0xf0] }
 0x103   :  { %2342 = vmatpush.bf16.msra.mxu1 %v3726_v13  ;;  %v3130_v13 = vor.u32 %v4328_v22, %v3127_v23  ;;  %v4545_v23 = vld [vmem:[#allocation8 + $0x798] sm:$0xf0] }
 0x104   :  { %2355 = vmatpush.bf16.msra.mxu2 %v3886_v33  ;;  %v3310_v33 = vor.u32 %v4373_v26, %v3307_v27  ;;  %v3027_v26 = vld [vmem:[#allocation8 + $0x1c] sm:$0xf0]  ;;  %v4573_v7 = vld [vmem:[#allocation8 + $0x87c] sm:$0xf] }
 0x105   :  { %2318 = vmatpush.bf16.msrb.mxu3 %v3366_v36  ;;  %2331 = vmatpush.bf16.msra.mxu0 %v3526_v41  ;;  %v3470_v36 = vor.u32 %v4413_v29, %v3467_v30  ;;  %v4408_v41 = vld [vmem:[#allocation8 + $0x354] sm:$0xf]  ;;  %v3647_v29 = vld [vmem:[#allocation8 + $0x4f4] sm:$0xf0]  ;;  %v4498_v30 = vld [vmem:[#allocation8 + $0x624] sm:$0xf] }
 0x107   :  { %2343 = vmatpush.bf16.msra.mxu1 %v3706_v47  ;;  %v4560_v47 = vld [vmem:[#allocation8 + $0x810] sm:$0xf0] }
 0x108   :  { %2356 = vmatpush.bf16.msra.mxu2 %v3866_v52  ;;  %v3450_v52 = vor.u32 %v4408_v41, %v3447_v42  ;;  %v4046_v24 = vor.u32 %v4560_v47, %v4045_v46  ;;  %v3810_v41 = vor.u32 %v4498_v30, %v3807_v31  ;;  %v4493_v46 = vld [vmem:[#allocation8 + $0x5fc] sm:$0xf]  ;;  %v3787_v47 = vld [vmem:[#allocation8 + $0x60c] sm:$0xf0]  ;;  %v4478_v31 = vld [vmem:[#allocation8 + $0x584] sm:$0xf] }
 0x109   :  { %2319 = vmatpush.bf16.msrb.mxu3 %v3346_v55  ;;  %2332 = vmatpush.bf16.msra.mxu0 %v3506_v58  ;;  %v4403_v55 = vld [vmem:[#allocation8 + $0x32c] sm:$0xf]  ;;  %v4025_v58 = vld [vmem:[#allocation8 + $0x7d8] sm:$0xf] }
 0x10a   :  { %v3430_v63 = vor.u32 %v4403_v55, %v3427_v56  ;;  %v4578_v56 = vld [vmem:[#allocation8 + $0x8a4] sm:$0xf] }
 0x10b   :  { %2344 = vmatpush.bf16.msra.mxu1 %v3686_v62  ;;  %v3067_v62 = vld [vmem:[#allocation8 + $0x6c] sm:$0xf0] }
 0x10c   :  { %2357 = vmatpush.bf16.msra.mxu2 %v3846_v3  ;;  %2320 = vmatmul.bf16.vlgmr.msrb.gmra.mxu3 %v4945_v2 }
 0x10d   :  { %2364 = vmatpush.bf16.msra.mxu3 %v4126_v59  ;;  %2377 = vmatpush.bf16.msrb.mxu0 %v3170_v61  ;;  %v4555_v59 = vld [vmem:[#allocation8 + $0x7e8] sm:$0xf0]  ;;  %v4313_v61 = vld [vmem:[#allocation8 + $0x5c] sm:$0xf] }
 0x10e   :  { %2333 = vmatmul.bf16.vlgmr.msra.gmra.mxu0 %v4947_v8  ;;  %v4026_v3 = vor.u32 %v4555_v59, %v4025_v58  ;;  %v3070_v6 = vor.u32 %v4313_v61, %v3067_v62  ;;  %v3790_v58 = vor.u32 %v4493_v46, %v3787_v47  ;;  %v3190_v59 = vor.u32 %v4343_v49, %v3187_v51  ;;  %v3607_v61 = vld [vmem:[#allocation8 + $0x4a4] sm:$0xf0]  ;;  %v4473_v49 = vld [vmem:[#allocation8 + $0x55c] sm:$0xf]  ;;  %v3707_v51 = vld [vmem:[#allocation8 + $0x56c] sm:$0xf0] }
 0x10f   :  { %2345 = vmatpush.bf16.msra.mxu1 %v3666_v17  ;;  %v3227_v17 = vld [vmem:[#allocation8 + $0x1ac] sm:$0xf0] }
 0x110   :  { %2358 = vmatpush.bf16.msra.mxu2 %v3826_v20  ;;  %v3387_v20 = vld [vmem:[#allocation8 + $0x2ec] sm:$0xf0] }
 0x111   :  { %2365 = vmatpush.bf16.msra.mxu3 %v4106_v12  ;;  %2378 = vmatpush.bf16.msrb.mxu0 %v3150_v16  ;;  %v4308_v12 = vld [vmem:[#allocation8 + $0x34] sm:$0xf]  ;;  %v4353_v16 = vld [vmem:[#allocation8 + $0x19c] sm:$0xf] }
 0x112   :  { %2346 = vmatmul.bf16.vlgmr.msra.gmra.mxu1 %v4953_v44  ;;  %v3050_v22 = vor.u32 %v4308_v12, %v3047_v14  ;;  %v3230_v27 = vor.u32 %v4353_v16, %v3227_v17  ;;  %v4443_v12 = vld [vmem:[#allocation8 + $0x46c] sm:$0xf]  ;;  %v3587_v14 = vld [vmem:[#allocation8 + $0x47c] sm:$0xf0] }
 0x113   :  { %2390 = vmatpush.bf16.msrb.mxu1 %v3330_v21  ;;  %2359 = vmatmul.bf16.vlgmr.msra.gmra.mxu2 %v4955_v50  ;;  %v3985_v21 = vld [vmem:[#allocation8 + $0x788] sm:$0xf]  ;;  %v4483_v16 = vld [vmem:[#allocation8 + $0x5ac] sm:$0xf]  ;;  %v3747_v17 = vld [vmem:[#allocation8 + $0x5bc] sm:$0xf0] }
 0x114   :  { %2403 = vmatpush.bf16.msrb.mxu2 %v3490_v25  ;;  %v4303_v25 = vld [vmem:[#allocation8 + $0xc] sm:$0xf]  ;;  %v3986_v34 = vor.u32 %v4545_v23, %v3985_v21  ;;  %v4977_v21 = vld [vmem:[#allocation10] sm:$0x1f]  ;;  %v3590_v23 = vor.u32 %v4443_v12, %v3587_v14 }
 0x115   :  { %2366 = vmatpush.bf16.msra.mxu3 %v4086_v28  ;;  %2379 = vmatpush.bf16.msrb.mxu0 %v3130_v13  ;;  %v4458_v28 = vld [vmem:[#allocation8 + $0x4e4] sm:$0xf]  ;;  %v3390_v13 = vor.u32 %v4393_v19, %v3387_v20  ;;  %v3030_v37 = vor.u32 %v4303_v25, %v3027_v26  ;;  %v4528_v19 = vld [vmem:[#allocation8 + $0x714] sm:$0xf]  ;;  %v3927_v20 = vld [vmem:[#allocation8 + $0x724] sm:$0xf0] }
 0x116   :  { %v3650_v39 = vor.u32 %v4458_v28, %v3647_v29  ;;  %v4568_v25 = vld [vmem:[#allocation8 + $0x854] sm:$0xf]  ;;  %v4087_v26 = vld [vmem:[#allocation8 + $0x864] sm:$0xf0]  ;;  %v4438_v28 = vld [vmem:[#allocation8 + $0x444] sm:$0xf]  ;;  %v3930_v30 = vor.u32 %v4528_v19, %v3927_v20 }
 0x117   :  { %2391 = vmatpush.bf16.msrb.mxu1 %v3310_v33  ;;  %v3207_v33 = vld [vmem:[#allocation8 + $0x184] sm:$0xf0]  ;;  %v3567_v29 = vld [vmem:[#allocation8 + $0x454] sm:$0xf0] }
 0x118   :  { %2404 = vmatpush.bf16.msrb.mxu2 %v3470_v36  ;;  %v3367_v36 = vld [vmem:[#allocation8 + $0x2c4] sm:$0xf0]  ;;  %v3210_v42 = vor.u32 %v4348_v32, %v3207_v33  ;;  %v3727_v32 = vld [vmem:[#allocation8 + $0x594] sm:$0xf0]  ;;  %v4090_v33 = vor.u32 %v4568_v25, %v4087_v26 }
 0x119   :  { %2367 = vmatpush.bf16.msra.mxu3 %v4066_v40  ;;  %2380 = vmatpush.bf16.msrb.mxu0 %v3110_v45  ;;  %v4453_v40 = vld [vmem:[#allocation8 + $0x4bc] sm:$0xf]  ;;  %v3627_v45 = vld [vmem:[#allocation8 + $0x4cc] sm:$0xf0]  ;;  %v3333_v25 = vld [vmem:[#allocation8 + $0x268] sm:$0xf] }
 0x11a   :  { %v3630_v55 = vor.u32 %v4453_v40, %v3627_v45  ;;  %v3547_v45 = vld [vmem:[#allocation8 + $0x42c] sm:$0xf0] }
 0x11b   :  { %2392 = vmatpush.bf16.msrb.mxu1 %v3290_v48  ;;  %v3370_v48 = vor.u32 %v4388_v35, %v3367_v36  ;;  %v3907_v35 = vld [vmem:[#allocation8 + $0x6fc] sm:$0xf0]  ;;  %v3570_v36 = vor.u32 %v4438_v28, %v3567_v29  ;;  %v4508_v28 = vld [vmem:[#allocation8 + $0x674] sm:$0xf]  ;;  %v3847_v29 = vld [vmem:[#allocation8 + $0x684] sm:$0xf0] }
 0x11c   :  { %2405 = vmatpush.bf16.msrb.mxu2 %v3450_v52  ;;  %v4383_v52 = vld [vmem:[#allocation8 + $0x28c] sm:$0xf] }
 0x11d   :  { %2368 = vmatpush.bf16.msra.mxu3 %v4046_v24  ;;  %2381 = vmatpush.bf16.msrb.mxu0 %v3090_v57  ;;  %v3967_v24 = vld [vmem:[#allocation8 + $0x774] sm:$0xf0]  ;;  %v3350_v62 = vor.u32 %v4383_v52, %v3347_v53  ;;  %v4518_v53 = vld [vmem:[#allocation8 + $0x6c4] sm:$0xf] }
 0x11e   :  { %v4127_v57 = vld [vmem:[#allocation8 + $0x8b4] sm:$0xf0] }
 0x11f   :  { %2393 = vmatpush.bf16.msrb.mxu1 %v3270_v60  ;;  %v4448_v60 = vld [vmem:[#allocation8 + $0x494] sm:$0xf] }
 0x120   :  { %2406 = vmatpush.bf16.msrb.mxu2 %v3430_v63  ;;  %v3970_v63 = vor.u32 %v4538_v54, %v3967_v24  ;;  %v3887_v54 = vld [vmem:[#allocation8 + $0x6d4] sm:$0xf0] }
 0x121   :  { %2369 = vmatpush.bf16.msra.mxu3 %v4026_v3  ;;  %2382 = vmatpush.bf16.msrb.mxu0 %v3070_v6  ;;  %v4130_v3 = vor.u32 %v4578_v56, %v4127_v57  ;;  %v3610_v6 = vor.u32 %v4448_v60, %v3607_v61  ;;  %v4558_v57 = vld [vmem:[#allocation8 + $0x804] sm:$0xf]  ;;  %v4428_v60 = vld [vmem:[#allocation8 + $0x3f4] sm:$0xf]  ;;  %v3527_v61 = vld [vmem:[#allocation8 + $0x404] sm:$0xf0] }
 0x123   :  { %2394 = vmatpush.bf16.msrb.mxu1 %v3250_v11  ;;  %v3770_v11 = vor.u32 %v4488_v0, %v3767_v1  ;;  %v4468_v0 = vld [vmem:[#allocation8 + $0x534] sm:$0xf]  ;;  %v3687_v1 = vld [vmem:[#allocation8 + $0x544] sm:$0xf0] }
 0x124   :  { %2407 = vmatpush.bf16.msrb.mxu2 %v3410_v15  ;;  %v3950_v15 = vor.u32 %v4533_v4, %v3947_v5  ;;  %v4513_v4 = vld [vmem:[#allocation8 + $0x69c] sm:$0xf]  ;;  %v3867_v5 = vld [vmem:[#allocation8 + $0x6ac] sm:$0xf0] }
 0x125   :  { %2370 = vmatpush.bf16.msra.mxu3 %v4006_v18  ;;  %2383 = vmatpush.bf16.msrb.mxu0 %v3050_v22  ;;  %v4110_v18 = vor.u32 %v4573_v7, %v4107_v10  ;;  %v4553_v7 = vld [vmem:[#allocation8 + $0x7dc] sm:$0xf]  ;;  %v4027_v10 = vld [vmem:[#allocation8 + $0x7ec] sm:$0xf0]  ;;  %v3870_v20 = vor.u32 %v4513_v4, %v3867_v5  ;;  %v3473_v5 = vld [vmem:[#allocation8 + $0x380] sm:$0xf] }
 0x126   :  { %v4030_v26 = vor.u32 %v4553_v7, %v4027_v10  ;;  %v3633_v10 = vld [vmem:[#allocation8 + $0x4c0] sm:$0xf] }
 0x127   :  { %2395 = vmatpush.bf16.msrb.mxu1 %v3230_v27  ;;  %v3750_v27 = vor.u32 %v4483_v16, %v3747_v17  ;;  %v3507_v16 = vld [vmem:[#allocation8 + $0x3dc] sm:$0xf0]  ;;  %v4463_v17 = vld [vmem:[#allocation8 + $0x50c] sm:$0xf] }
 0x128   :  { %2408 = vmatpush.bf16.msrb.mxu2 %v3390_v13  ;;  %v2126_v22 = vpop.f32.mrf.mxu0  ;;  %v638_v13 = vperm.slane %v4977_v21, 0 }
 0x129   :  { %2371 = vmatpush.bf16.msra.mxu3 %v3986_v34  ;;  %2384 = vmatpush.bf16.msrb.mxu0 %v3030_v37  ;;  %v4523_v34 = vld [vmem:[#allocation8 + $0x6ec] sm:$0xf] }
 0x12a   :  { %v4563_v37 = vld [vmem:[#allocation8 + $0x82c] sm:$0xf] }
 0x12b   :  { %2396 = vmatpush.bf16.msrb.mxu1 %v3210_v42  ;;  %v4433_v42 = vld [vmem:[#allocation8 + $0x41c] sm:$0xf] }
 0x12c   :  { %2409 = vmatpush.bf16.msrb.mxu2 %v3370_v48  ;;  %2372 = vmatmul.bf16.vlgmr.msra.gmra.mxu3 %v4959_v9  ;;  %v3910_v48 = vor.u32 %v4523_v34, %v3907_v35  ;;  %v3550_v56 = vor.u32 %v4433_v42, %v3547_v45  ;;  %v3153_v35 = vld [vmem:[#allocation8 + $0x100] sm:$0xf]  ;;  %v4503_v45 = vld [vmem:[#allocation8 + $0x64c] sm:$0xf] }
 0x12d   :  { %2416 = vmatpush.bf16.msrb.mxu3 %v3650_v39  ;;  %2429 = vmatpush.bf16.msra.mxu0 %v3810_v41  ;;  %v4067_v39 = vld [vmem:[#allocation8 + $0x83c] sm:$0xf0]  ;;  %v3730_v41 = vor.u32 %v4478_v31, %v3727_v32  ;;  %v4548_v31 = vld [vmem:[#allocation8 + $0x7b4] sm:$0xf]  ;;  %v4007_v32 = vld [vmem:[#allocation8 + $0x7c4] sm:$0xf0] }
 0x12e   :  { %2385 = vmatmul.bf16.vlgmr.msrb.gmra.mxu0 %v4937_v38  ;;  %v2113_v40 = vpop.f32.mrf.mxu3  ;;  %v4070_v52 = vor.u32 %v4563_v37, %v4067_v39  ;;  %v3850_v37 = vor.u32 %v4508_v28, %v3847_v29  ;;  %v4336_v39 = vld [vmem:[#allocation8 + $0x110] sm:$0xf0]  ;;  %v4010_v42 = vor.u32 %v4548_v31, %v4007_v32  ;;  %v3613_v28 = vld [vmem:[#allocation8 + $0x498] sm:$0xf]  ;;  %v4451_v29 = vld [vmem:[#allocation8 + $0x4a8] sm:$0xf0] }
 0x12f   :  { %2397 = vmatpush.bf16.msrb.mxu1 %v3190_v59  ;;  %v2114_v46 = vadd.f32 %v2113_v40, %v638_v13  ;;  %v2139_v47 = vpop.f32.mrf.mxu1  ;;  %v3710_v59 = vor.u32 %v4473_v49, %v3707_v51  ;;  %v3313_v40 = vld [vmem:[#allocation8 + $0x240] sm:$0xf]  ;;  %v3493_v49 = vld [vmem:[#allocation8 + $0x3a8] sm:$0xf]  ;;  %v4421_v51 = vld [vmem:[#allocation8 + $0x3b8] sm:$0xf0] }
 0x130   :  { %2410 = vmatpush.bf16.msrb.mxu2 %v3350_v62  ;;  %v3093_v32 = vld [vmem:[#allocation8 + $0x88] sm:$0xf] }
 0x131   :  { %2417 = vmatpush.bf16.msrb.mxu3 %v3630_v55  ;;  %2430 = vmatpush.bf16.msra.mxu0 %v3790_v58  ;;  %v2127_v24 = vadd.f32 %v2126_v22, %v2114_v46  ;;  %v2128_v55 = vpop.f32.mrf.mxu0  ;;  %v4047_v58 = vld [vmem:[#allocation8 + $0x814] sm:$0xf0]  ;;  %v3173_v22 = vld [vmem:[#allocation8 + $0x128] sm:$0xf]  ;;  %v3827_v46 = vld [vmem:[#allocation8 + $0x65c] sm:$0xf0] }
 0x132   :  { %2398 = vmatmul.bf16.vlgmr.msrb.gmra.mxu1 %v4940_v43  ;;  %v4461_v55 = vld [vmem:[#allocation8 + $0x4f8] sm:$0xf0] }
 0x133   :  { %2442 = vmatpush.bf16.msra.mxu1 %v3970_v63  ;;  %2411 = vmatmul.bf16.vlgmr.msrb.gmra.mxu2 %v4945_v2  ;;  %v4982_v62 = vadd.f32 %v2139_v47, %v2127_v24  ;;  %v3890_v63 = vor.u32 %v4518_v53, %v3887_v54  ;;  %v4543_v47 = vld [vmem:[#allocation8 + $0x78c] sm:$0xf]  ;;  %v3154_v54 = vor.u32 %v4336_v39, %v3153_v35  ;;  %v3653_v24 = vld [vmem:[#allocation8 + $0x4e8] sm:$0xf]  ;;  %v3433_v39 = vld [vmem:[#allocation8 + $0x330] sm:$0xf] }
 0x134   :  { %2455 = vmatpush.bf16.msra.mxu2 %v4130_v3  ;;  %v4050_v3 = vor.u32 %v4558_v57, %v4047_v58  ;;  %v3830_v58 = vor.u32 %v4503_v45, %v3827_v46  ;;  %v3654_v4 = vor.u32 %v4461_v55, %v3653_v24  ;;  %v3253_v35 = vld [vmem:[#allocation8 + $0x1c8] sm:$0xf]  ;;  %v3593_v45 = vld [vmem:[#allocation8 + $0x470] sm:$0xf]  ;;  %v4446_v46 = vld [vmem:[#allocation8 + $0x480] sm:$0xf0] }
 0x135   :  { %2418 = vmatpush.bf16.msrb.mxu3 %v3610_v6  ;;  %2431 = vmatpush.bf16.msra.mxu0 %v3770_v11  ;;  %v3530_v6 = vor.u32 %v4428_v60, %v3527_v61  ;;  %v4423_v11 = vld [vmem:[#allocation8 + $0x3cc] sm:$0xf]  ;;  %v3594_v24 = vor.u32 %v4446_v46, %v3593_v45  ;;  %v3413_v55 = vld [vmem:[#allocation8 + $0x308] sm:$0xf]  ;;  %v3793_v46 = vld [vmem:[#allocation8 + $0x600] sm:$0xf] }
 0x136   :  { %v4984_v12 = vpop.f32.mrf.mxu2  ;;  %v2115_v14 = vpop.f32.mrf.mxu3  ;;  %v3510_v13 = vor.u32 %v4423_v11, %v3507_v16  ;;  %v4331_v60 = vld [vmem:[#allocation8 + $0xe8] sm:$0xf0]  ;;  %v4456_v11 = vld [vmem:[#allocation8 + $0x4d0] sm:$0xf0]  ;;  %v4326_v16 = vld [vmem:[#allocation8 + $0xc0] sm:$0xf0] }
 0x137   :  { %2443 = vmatpush.bf16.msra.mxu1 %v3950_v15  ;;  %v3690_v15 = vor.u32 %v4468_v0, %v3687_v1  ;;  %v2141_v19 = vpop.f32.mrf.mxu1  ;;  %v3293_v0 = vld [vmem:[#allocation8 + $0x218] sm:$0xf]  ;;  %v4371_v1 = vld [vmem:[#allocation8 + $0x228] sm:$0xf0] }
 0x138   :  { %2456 = vmatpush.bf16.msra.mxu2 %v4110_v18  ;;  %v3667_v18 = vld [vmem:[#allocation8 + $0x51c] sm:$0xf0]  ;;  %v3294_v14 = vor.u32 %v4371_v1, %v3293_v0  ;;  %v4366_v19 = vld [vmem:[#allocation8 + $0x200] sm:$0xf0]  ;;  %v3053_v1 = vld [vmem:[#allocation8 + $0x38] sm:$0xf] }
 0x139   :  { %2419 = vmatpush.bf16.msrb.mxu3 %v3590_v23  ;;  %2432 = vmatpush.bf16.msra.mxu0 %v3750_v27  ;;  %v4341_v23 = vld [vmem:[#allocation8 + $0x138] sm:$0xf0] }
 0x13a   :  { %v4381_v27 = vld [vmem:[#allocation8 + $0x278] sm:$0xf0]  ;;  %v3174_v34 = vor.u32 %v4341_v23, %v3173_v22  ;;  %v3453_v22 = vld [vmem:[#allocation8 + $0x358] sm:$0xf]  ;;  %v4411_v23 = vld [vmem:[#allocation8 + $0x368] sm:$0xf0] }
 0x13b   :  { %2444 = vmatpush.bf16.msra.mxu1 %v3930_v30  ;;  %v4986_v30 = vpop.f32.mrf.mxu0 }
 0x13c   :  { %2457 = vmatpush.bf16.msra.mxu2 %v4090_v33  ;;  %v3670_v33 = vor.u32 %v4463_v17, %v3667_v18  ;;  %v3273_v18 = vld [vmem:[#allocation8 + $0x1f0] sm:$0xf] }
 0x13d   :  { %2420 = vmatpush.bf16.msrb.mxu3 %v3570_v36  ;;  %2433 = vmatpush.bf16.msra.mxu0 %v3730_v41  ;;  %v3334_v36 = vor.u32 %v4381_v27, %v3333_v25  ;;  %v4376_v41 = vld [vmem:[#allocation8 + $0x250] sm:$0xf0]  ;;  %v3274_v31 = vor.u32 %v4366_v19, %v3273_v18  ;;  %v3033_v19 = vld [vmem:[#allocation8 + $0x10] sm:$0xf] }
 0x13e   :  { %v4988_v53 = vpop.f32.mrf.mxu3  ;;  %v3314_v57 = vor.u32 %v4376_v41, %v3313_v40  ;;  %v4406_v40 = vld [vmem:[#allocation8 + $0x340] sm:$0xf0]  ;;  %v4436_v18 = vld [vmem:[#allocation8 + $0x430] sm:$0xf0] }
 0x13f   :  { %2445 = vmatpush.bf16.msra.mxu1 %v3910_v48  ;;  %v3987_v48 = vld [vmem:[#allocation8 + $0x79c] sm:$0xf0] }
 0x140   :  { %2458 = vmatpush.bf16.msra.mxu2 %v4070_v52  ;;  %v2154_v52 = vpop.f32.mrf.mxu2  ;;  %v3990_v61 = vor.u32 %v4543_v47, %v3987_v48  ;;  %v3073_v48 = vld [vmem:[#allocation8 + $0x60] sm:$0xf] }
 0x141   :  { %2421 = vmatpush.bf16.msrb.mxu3 %v3550_v56  ;;  %2434 = vmatpush.bf16.msra.mxu0 %v3710_v59  ;;  %v4990_v56 = vpop.f32.mrf.mxu1  ;;  %v3133_v59 = vld [vmem:[#allocation8 + $0xd8] sm:$0xf]  ;;  %v3233_v52 = vld [vmem:[#allocation8 + $0x1a0] sm:$0xf] }
 0x142   :  { %v3134_v7 = vor.u32 %v4331_v60, %v3133_v59  ;;  %v3573_v60 = vld [vmem:[#allocation8 + $0x448] sm:$0xf] }
 0x143   :  { %2446 = vmatpush.bf16.msra.mxu1 %v3890_v63  ;;  %v3494_v63 = vor.u32 %v4421_v51, %v3493_v49  ;;  %v4316_v49 = vld [vmem:[#allocation8 + $0x70] sm:$0xf0]  ;;  %v3434_v51 = vor.u32 %v4406_v40, %v3433_v39  ;;  %v4431_v39 = vld [vmem:[#allocation8 + $0x408] sm:$0xf0] }
 0x144   :  { %2459 = vmatpush.bf16.msra.mxu2 %v4050_v3  ;;  %v2180_v3 = vpop.f32.mrf.mxu0  ;;  %v3074_v59 = vor.u32 %v4316_v49, %v3073_v48 }
 0x145   :  { %2422 = vmatpush.bf16.msrb.mxu3 %v3530_v6  ;;  %2435 = vmatpush.bf16.msra.mxu0 %v3690_v15  ;;  %v4416_v6 = vld [vmem:[#allocation8 + $0x390] sm:$0xf0]  ;;  %v3113_v15 = vld [vmem:[#allocation8 + $0xb0] sm:$0xf]  ;;  %v4311_v3 = vld [vmem:[#allocation8 + $0x48] sm:$0xf0] }
 0x146   :  { %v3474_v17 = vor.u32 %v4416_v6, %v3473_v5  ;;  %v3114_v27 = vor.u32 %v4326_v16, %v3113_v15  ;;  %v3213_v6 = vld [vmem:[#allocation8 + $0x178] sm:$0xf]  ;;  %v3054_v16 = vor.u32 %v4311_v3, %v3053_v1 }
 0x147   :  { %2447 = vmatpush.bf16.msra.mxu1 %v3870_v20  ;;  %v3634_v20 = vor.u32 %v4456_v11, %v3633_v10  ;;  %v3393_v11 = vld [vmem:[#allocation8 + $0x2e0] sm:$0xf] }
 0x148   :  { %2460 = vmatpush.bf16.msra.mxu2 %v4030_v26  ;;  %v4994_v25 = vpop.f32.mrf.mxu2  ;;  %v2167_v26 = vpop.f32.mrf.mxu3 }
 0x149   :  { %2423 = vmatpush.bf16.msrb.mxu3 %v3510_v13  ;;  %2436 = vmatpush.bf16.msra.mxu0 %v3670_v33  ;;  %v2193_v13 = vpop.f32.mrf.mxu1  ;;  %v4321_v33 = vld [vmem:[#allocation8 + $0x98] sm:$0xf0]  ;;  %v4346_v26 = vld [vmem:[#allocation8 + $0x160] sm:$0xf0] }
 0x14a   :  { %v3973_v13 = vld [vmem:[#allocation8 + $0x768] sm:$0xf] }
 0x14b   :  { %2448 = vmatpush.bf16.msra.mxu1 %v3850_v37  ;;  %v3614_v37 = vor.u32 %v4451_v29, %v3613_v28  ;;  %v3813_v28 = vld [vmem:[#allocation8 + $0x628] sm:$0xf]  ;;  %v4501_v29 = vld [vmem:[#allocation8 + $0x638] sm:$0xf0] }
 0x14c   :  { %2461 = vmatpush.bf16.msra.mxu2 %v4010_v42  ;;  %2424 = vmatmul.bf16.vlgmr.msrb.gmra.mxu3 %v4947_v8  ;;  %v4998_v41 = vpop.f32.mrf.mxu0  ;;  %v3094_v42 = vor.u32 %v4321_v33, %v3093_v32  ;;  %v4541_v32 = vld [vmem:[#allocation8 + $0x778] sm:$0xf0]  ;;  %v3373_v33 = vld [vmem:[#allocation8 + $0x2b8] sm:$0xf]  ;;  %v3814_v45 = vor.u32 %v4501_v29, %v3813_v28 }
 0x14d   :  { %2468 = vmatpush.bf16.msra.mxu3 %v3174_v34  ;;  %2481 = vmatpush.bf16.msrb.mxu0 %v3334_v36  ;;  %v3454_v34 = vor.u32 %v4411_v23, %v3453_v22  ;;  %v4361_v36 = vld [vmem:[#allocation8 + $0x1d8] sm:$0xf0]  ;;  %v4306_v22 = vld [vmem:[#allocation8 + $0x20] sm:$0xf0]  ;;  %v3193_v23 = vld [vmem:[#allocation8 + $0x150] sm:$0xf]  ;;  %v3974_v48 = vor.u32 %v4541_v32, %v3973_v13 }
 0x14e   :  { %2437 = vmatmul.bf16.vlgmr.msra.gmra.mxu0 %v4953_v44  ;;  %v3254_v47 = vor.u32 %v4361_v36, %v3253_v35  ;;  %v3034_v36 = vor.u32 %v4306_v22, %v3033_v19  ;;  %v3753_v22 = vld [vmem:[#allocation8 + $0x5b0] sm:$0xf]  ;;  %v4588_v28 = vld [vmem:[#allocation11 + $0x30] sm:$0xff]  ;;  %v3733_v32 = vld [vmem:[#allocation8 + $0x588] sm:$0xf] }
 0x14f   :  { %2449 = vmatpush.bf16.msra.mxu1 %v3830_v58  ;;  %v4093_v29 = vld [vmem:[#allocation8 + $0x858] sm:$0xf] }
 0x150   :  { %2462 = vmatpush.bf16.msra.mxu2 %v3990_v61  ;;  %v2206_v58 = vpop.f32.mrf.mxu2  ;;  %v4441_v61 = vld [vmem:[#allocation8 + $0x458] sm:$0xf0] }
 0x151   :  { %2469 = vmatpush.bf16.msra.mxu3 %v3154_v54  ;;  %2482 = vmatpush.bf16.msrb.mxu0 %v3314_v57  ;;  %v4356_v54 = vld [vmem:[#allocation8 + $0x1b0] sm:$0xf0]  ;;  %v4401_v57 = vld [vmem:[#allocation8 + $0x318] sm:$0xf0]  ;;  %v3574_v10 = vor.u32 %v4441_v61, %v3573_v60  ;;  %v3513_v58 = vld [vmem:[#allocation8 + $0x3d0] sm:$0xf] }
 0x152   :  { %2450 = vmatmul.bf16.vlgmr.msra.gmra.mxu1 %v4955_v50  ;;  %v3234_v0 = vor.u32 %v4356_v54, %v3233_v52  ;;  %v3414_v5 = vor.u32 %v4401_v57, %v3413_v55  ;;  %v3953_v52 = vld [vmem:[#allocation8 + $0x740] sm:$0xf]  ;;  %v4536_v54 = vld [vmem:[#allocation8 + $0x750] sm:$0xf0]  ;;  %v3353_v55 = vld [vmem:[#allocation8 + $0x290] sm:$0xf] }
 0x153   :  { %2494 = vmatpush.bf16.msrb.mxu1 %v3494_v63  ;;  %2463 = vmatmul.bf16.vlgmr.msra.gmra.mxu2 %v4959_v9  ;;  %v5000_v63 = vpop.f32.mrf.mxu3  ;;  %v4386_v57 = vld [vmem:[#allocation8 + $0x2a0] sm:$0xf0]  ;;  %v4133_v60 = vld [vmem:[#allocation8 + $0x8a8] sm:$0xf]  ;;  %v4581_v61 = vld [vmem:[#allocation8 + $0x8b8] sm:$0xf0]  ;;  %v3954_v1 = vor.u32 %v4536_v54, %v3953_v52 }
 0x154   :  { %2507 = vmatpush.bf16.msrb.mxu2 %v3654_v4  ;;  %v5002_v4 = vpop.f32.mrf.mxu1  ;;  %v2232_v15 = vpop.f32.mrf.mxu0  ;;  %v3354_v3 = vor.u32 %v4386_v57, %v3353_v55  ;;  %v4586_v52 = vld [vmem:[#allocation11 + $0x20] sm:$0xff] }
 0x155   :  { %2470 = vmatpush.bf16.msra.mxu3 %v3134_v7  ;;  %2483 = vmatpush.bf16.msrb.mxu0 %v3294_v14  ;;  %v4351_v7 = vld [vmem:[#allocation8 + $0x188] sm:$0xf0]  ;;  %v4396_v14 = vld [vmem:[#allocation8 + $0x2f0] sm:$0xf0]  ;;  %v4053_v54 = vld [vmem:[#allocation8 + $0x808] sm:$0xf] }
 0x157   :  { %2495 = vmatpush.bf16.msrb.mxu1 %v3474_v17  ;;  %v3553_v17 = vld [vmem:[#allocation8 + $0x420] sm:$0xf] }
 0x158   :  { %2508 = vmatpush.bf16.msrb.mxu2 %v3634_v20  ;;  %v3214_v20 = vor.u32 %v4351_v7, %v3213_v6  ;;  %v5004_v35 = vpop.f32.mrf.mxu2  ;;  %v4491_v6 = vld [vmem:[#allocation8 + $0x5e8] sm:$0xf0] }
 0x159   :  { %2471 = vmatpush.bf16.msra.mxu3 %v3114_v27  ;;  %2484 = vmatpush.bf16.msrb.mxu0 %v3274_v31  ;;  %v3394_v27 = vor.u32 %v4396_v14, %v3393_v11  ;;  %v3554_v31 = vor.u32 %v4436_v18, %v3553_v17  ;;  %v3933_v11 = vld [vmem:[#allocation8 + $0x718] sm:$0xf]  ;;  %v4531_v14 = vld [vmem:[#allocation8 + $0x728] sm:$0xf0]  ;;  %v4113_v17 = vld [vmem:[#allocation8 + $0x880] sm:$0xf] }
 0x15a   :  { %v4576_v18 = vld [vmem:[#allocation8 + $0x890] sm:$0xf0] }
 0x15b   :  { %2496 = vmatpush.bf16.msrb.mxu1 %v3454_v34  ;;  %v4391_v34 = vld [vmem:[#allocation8 + $0x2c8] sm:$0xf0]  ;;  %v2219_v40 = vpop.f32.mrf.mxu3 }
 0x15c   :  { %2509 = vmatpush.bf16.msrb.mxu2 %v3614_v37  ;;  %v3533_v37 = vld [vmem:[#allocation8 + $0x3f8] sm:$0xf]  ;;  %v3374_v49 = vor.u32 %v4391_v34, %v3373_v33  ;;  %v4481_v33 = vld [vmem:[#allocation8 + $0x598] sm:$0xf0]  ;;  %v4073_v40 = vld [vmem:[#allocation8 + $0x830] sm:$0xf] }
 0x15d   :  { %2472 = vmatpush.bf16.msra.mxu3 %v3094_v42  ;;  %2485 = vmatpush.bf16.msrb.mxu0 %v3254_v47  ;;  %v3194_v42 = vor.u32 %v4346_v26, %v3193_v23  ;;  %v2245_v47 = vpop.f32.mrf.mxu1  ;;  %v4486_v23 = vld [vmem:[#allocation8 + $0x5c0] sm:$0xf0]  ;;  %v3913_v26 = vld [vmem:[#allocation8 + $0x6f0] sm:$0xf] }
 0x15e   :  { %v3754_v13 = vor.u32 %v4486_v23, %v3753_v22  ;;  %v3713_v47 = vld [vmem:[#allocation8 + $0x560] sm:$0xf]  ;;  %v4013_v22 = vld [vmem:[#allocation8 + $0x7b8] sm:$0xf]  ;;  %v4551_v23 = vld [vmem:[#allocation8 + $0x7c8] sm:$0xf0] }
 0x15f   :  { %2497 = vmatpush.bf16.msrb.mxu1 %v3434_v51  ;;  %v4496_v51 = vld [vmem:[#allocation8 + $0x610] sm:$0xf0] }
 0x160   :  { %2510 = vmatpush.bf16.msrb.mxu2 %v3594_v24  ;;  %v3534_v24 = vor.u32 %v4431_v39, %v3533_v37  ;;  %v2258_v15 = vpop.f32.mrf.mxu2  ;;  %v4521_v37 = vld [vmem:[#allocation8 + $0x6d8] sm:$0xf0]  ;;  %v4587_v39 = vld [vmem:[#allocation11 + $0x28] sm:$0xff] }
 0x161   :  { %2473 = vmatpush.bf16.msra.mxu3 %v3074_v59  ;;  %2486 = vmatpush.bf16.msrb.mxu0 %v3234_v0  ;;  %v4426_v59 = vld [vmem:[#allocation8 + $0x3e0] sm:$0xf0]  ;;  %v3794_v0 = vor.u32 %v4496_v51, %v3793_v46  ;;  %v4516_v51 = vld [vmem:[#allocation8 + $0x6b0] sm:$0xf0] }
 0x162   :  { %v3514_v7 = vor.u32 %v4426_v59, %v3513_v58 }
 0x163   :  { %2498 = vmatpush.bf16.msrb.mxu1 %v3414_v5  ;;  %v3773_v5 = vld [vmem:[#allocation8 + $0x5d8] sm:$0xf] }
 0x164   :  { %2511 = vmatpush.bf16.msrb.mxu2 %v3574_v10  ;;  %v4134_v10 = vor.u32 %v4581_v61, %v4133_v60  ;;  %v3774_v19 = vor.u32 %v4491_v6, %v3773_v5  ;;  %v3693_v60 = vld [vmem:[#allocation8 + $0x538] sm:$0xf]  ;;  %v4471_v61 = vld [vmem:[#allocation8 + $0x548] sm:$0xf0]  ;;  %v4585_v6 = vld [vmem:[#allocation11 + $0x18] sm:$0xff] }
 0x165   :  { %2474 = vmatpush.bf16.msra.mxu3 %v3054_v16  ;;  %2487 = vmatpush.bf16.msrb.mxu0 %v3214_v20  ;;  %v4589_v16 = vld [vmem:[#allocation11 + $0x38] sm:$0xff]  ;;  %v3934_v20 = vor.u32 %v4531_v14, %v3933_v11  ;;  %v4511_v5 = vld [vmem:[#allocation8 + $0x688] sm:$0xf0]  ;;  %v3694_v15 = vor.u32 %v4471_v61, %v3693_v60  ;;  %v4600_v60 = vld [vmem:[#allocation11 + $0x90] sm:$0xff] }
 0x167   :  { %2499 = vmatpush.bf16.msrb.mxu1 %v3394_v27  ;;  %v4526_v27 = vld [vmem:[#allocation8 + $0x700] sm:$0xf0] }
 0x168   :  { %2512 = vmatpush.bf16.msrb.mxu2 %v3554_v31  ;;  %v3914_v31 = vor.u32 %v4526_v27, %v3913_v26 }
 0x169   :  { %2475 = vmatpush.bf16.msra.mxu3 %v3034_v36  ;;  %2488 = vmatpush.bf16.msrb.mxu0 %v3194_v42  ;;  %v3893_v36 = vld [vmem:[#allocation8 + $0x6c8] sm:$0xf]  ;;  %v4566_v42 = vld [vmem:[#allocation8 + $0x840] sm:$0xf0] }
 0x16a   :  { %v3894_v46 = vor.u32 %v4521_v37, %v3893_v36  ;;  %v4546_v36 = vld [vmem:[#allocation8 + $0x7a0] sm:$0xf0]  ;;  %v4596_v37 = vld [vmem:[#allocation11 + $0x70] sm:$0xff] }
 0x16b   :  { %2500 = vmatpush.bf16.msrb.mxu1 %v3374_v49  ;;  %v3873_v49 = vld [vmem:[#allocation8 + $0x6a0] sm:$0xf] }
 0x16c   :  { %2513 = vmatpush.bf16.msrb.mxu2 %v3534_v24  ;;  %2476 = vmatmul.bf16.vlgmr.msra.gmra.mxu3 %v4937_v38  ;;  %v4114_v38 = vor.u32 %v4576_v18, %v4113_v17  ;;  %v4561_v24 = vld [vmem:[#allocation8 + $0x818] sm:$0xf0]  ;;  %v3874_v59 = vor.u32 %v4516_v51, %v3873_v49  ;;  %v3673_v17 = vld [vmem:[#allocation8 + $0x510] sm:$0xf]  ;;  %v4466_v18 = vld [vmem:[#allocation8 + $0x520] sm:$0xf0] }
 0x16d   :  { %2520 = vmatpush.bf16.msrb.mxu3 %v3814_v45  ;;  %2533 = vmatpush.bf16.msra.mxu0 %v3974_v48  ;;  %v5010_v45 = vpop.f32.mrf.mxu0  ;;  %v4074_v48 = vor.u32 %v4566_v42, %v4073_v40  ;;  %v4604_v42 = vld [vmem:[#allocation11 + $0xb0] sm:$0xff]  ;;  %v4602_v51 = vld [vmem:[#allocation11 + $0xa0] sm:$0xff] }
 0x16e   :  { %2489 = vmatmul.bf16.vlgmr.msrb.gmra.mxu0 %v4940_v43  ;;  %v4571_v43 = vld [vmem:[#allocation8 + $0x868] sm:$0xf0] }
 0x16f   :  { %2501 = vmatpush.bf16.msrb.mxu1 %v3354_v3  ;;  %v4094_v34 = vor.u32 %v4571_v43, %v4093_v29  ;;  %v5012_v57 = vpop.f32.mrf.mxu3  ;;  %v5014_v58 = vpop.f32.mrf.mxu1  ;;  %v3853_v3 = vld [vmem:[#allocation8 + $0x678] sm:$0xf]  ;;  %v4597_v43 = vld [vmem:[#allocation11 + $0x78] sm:$0xff] }
 0x170   :  { %2514 = vmatpush.bf16.msrb.mxu2 %v3514_v7  ;;  %v4033_v7 = vld [vmem:[#allocation8 + $0x7e0] sm:$0xf] }
 0x171   :  { %2521 = vmatpush.bf16.msrb.mxu3 %v3794_v0  ;;  %2534 = vmatpush.bf16.msra.mxu0 %v3954_v1  ;;  %v2153_v0 = vadd.f32 %v4984_v12, %v4982_v62  ;;  %v4054_v1 = vor.u32 %v4561_v24, %v4053_v54  ;;  %v3833_v62 = vld [vmem:[#allocation8 + $0x650] sm:$0xf]  ;;  %v4506_v12 = vld [vmem:[#allocation8 + $0x660] sm:$0xf0] }
 0x172   :  { %2502 = vmatmul.bf16.vlgmr.msrb.gmra.mxu1 %v4945_v2  ;;  %v3734_v2 = vor.u32 %v4481_v33, %v3733_v32  ;;  %v3834_v29 = vor.u32 %v4506_v12, %v3833_v62  ;;  %v4605_v32 = vld [vmem:[#allocation11 + $0xb8] sm:$0xff]  ;;  %v4583_v33 = vld [vmem:[#allocation11 + $0x8] sm:$0xff]  ;;  %v4610_v62 = vld [vmem:[#allocation11 + $0xe0] sm:$0xff] }
 0x173   :  { %2546 = vmatpush.bf16.msra.mxu1 %v4134_v10  ;;  %2515 = vmatmul.bf16.vlgmr.msrb.gmra.mxu2 %v4947_v8  ;;  %v4476_v8 = vld [vmem:[#allocation8 + $0x570] sm:$0xf0]  ;;  %v2166_v11 = vadd.f32 %v4988_v53, %v2153_v0  ;;  %v3674_v53 = vor.u32 %v4466_v18, %v3673_v17  ;;  %v4601_v54 = vld [vmem:[#allocation11 + $0x98] sm:$0xff] }
 0x174   :  { %2893 = vmatpush.bf16.msra.mxu2 %v4589_v16  ;;  %v3714_v55 = vor.u32 %v4476_v8, %v3713_v47  ;;  %v4556_v10 = vld [vmem:[#allocation8 + $0x7f0] sm:$0xf0]  ;;  %v3854_v16 = vor.u32 %v4511_v5, %v3853_v3  ;;  %v4613_v3 = vld [vmem:[#allocation11 + $0xf8] sm:$0xff] }
 0x175   :  { %2522 = vmatpush.bf16.msrb.mxu3 %v3774_v19  ;;  %2535 = vmatpush.bf16.msra.mxu0 %v3934_v20  ;;  %v2284_v14 = vpop.f32.mrf.mxu0  ;;  %v4034_v19 = vor.u32 %v4556_v10, %v4033_v7  ;;  %v4584_v20 = vld [vmem:[#allocation11 + $0x10] sm:$0xff]  ;;  %v4591_v0 = vld [vmem:[#allocation11 + $0x48] sm:$0xff]  ;;  %v640_v7 = vperm.slane %v4977_v21, 2 }
 0x176   :  { %v5020_v26 = vpop.f32.mrf.mxu2  ;;  %v4612_v14 = vld [vmem:[#allocation11 + $0xf0] sm:$0xff] }
 0x177   :  { %2547 = vmatpush.bf16.msra.mxu1 %v4114_v38  ;;  %v2179_v38 = vadd.f32 %v4986_v30, %v2166_v11  ;;  %v2271_v27 = vpop.f32.mrf.mxu3  ;;  %v4598_v11 = vld [vmem:[#allocation11 + $0x80] sm:$0xff] }
 0x178   :  { %2894 = vmatpush.bf16.msra.mxu2 %v4588_v28  ;;  %v2297_v28 = vpop.f32.mrf.mxu1 }
 0x179   :  { %2523 = vmatpush.bf16.msrb.mxu3 %v3754_v13  ;;  %2536 = vmatpush.bf16.msra.mxu0 %v3914_v31  ;;  %v639_v13 = vperm.slane %v4977_v21, 1  ;;  %v4014_v31 = vor.u32 %v4551_v23, %v4013_v22  ;;  %v2192_v30 = vadd.f32 %v4990_v56, %v2179_v38  ;;  %v4595_v56 = vld [vmem:[#allocation11 + $0x68] sm:$0xff]  ;;  %v4608_v38 = vld [vmem:[#allocation11 + $0xd0] sm:$0xff] }
 0x17b   :  { %2548 = vmatpush.bf16.msra.mxu1 %v4094_v34  ;;  %v3993_v34 = vld [vmem:[#allocation8 + $0x790] sm:$0xf] }
 0x17c   :  { %2895 = vmatpush.bf16.msra.mxu2 %v4587_v39  ;;  %v2205_v39 = vadd.f32 %v4994_v25, %v639_v13  ;;  %v3994_v40 = vor.u32 %v4546_v36, %v3993_v34 }
 0x17d   :  { %2524 = vmatpush.bf16.msrb.mxu3 %v3734_v2  ;;  %2537 = vmatpush.bf16.msra.mxu0 %v3894_v46  ;;  %v4582_v2 = vld [vmem:[#allocation11] sm:$0xff]  ;;  %v2559_v46 = vmax.f32 %v2192_v30, 0.0  ;;  %v641_v30 = vperm.slane %v4977_v21, 3 }
 0x17e   :  { %v2218_v47 = vadd.f32 %v5000_v63, %v2205_v39  ;;  %v2310_v8 = vpop.f32.mrf.mxu2 }
 0x17f   :  { %2549 = vmatpush.bf16.msra.mxu1 %v4074_v48  ;;  %v4603_v48 = vld [vmem:[#allocation11 + $0xa8] sm:$0xff]  ;;  %v2564_v25 = vpack.c.bf16 %v2559_v46, %v2559_v46 }
 0x180   :  { %2896 = vmatpush.bf16.msra.mxu2 %v4586_v52  ;;  %v2231_v49 = vadd.f32 %v4998_v41, %v2218_v47 }
 0x181   :  { %2525 = vmatpush.bf16.msrb.mxu3 %v3714_v55  ;;  %2538 = vmatpush.bf16.msra.mxu0 %v3874_v59  ;;  %v4592_v55 = vld [vmem:[#allocation11 + $0x50] sm:$0xff] }
 0x182   :  { %v2244_v63 = vadd.f32 %v5002_v4, %v2231_v49 }
 0x183   :  { %2550 = vmatpush.bf16.msra.mxu1 %v4054_v1  ;;  %v4599_v1 = vld [vmem:[#allocation11 + $0x88] sm:$0xff] }
 0x184   :  { %2897 = vmatpush.bf16.msra.mxu2 %v4585_v6  ;;  %v2257_v24 = vadd.f32 %v5004_v35, %v2244_v63  ;;  %v4590_v6 = vld [vmem:[#allocation11 + $0x40] sm:$0xff] }
 0x185   :  { %2526 = vmatpush.bf16.msrb.mxu3 %v3694_v15  ;;  %2539 = vmatpush.bf16.msra.mxu0 %v3854_v16  ;;  %v2296_v16 = vadd.f32 %v5014_v58, %v640_v7  ;;  %v642_v7 = vperm.slane %v4977_v21, 4  ;;  %v4636_v21 = vld [vmem:[#allocation13] ss:$0 sm:$0xff] }
 0x186   :  { %v2270_v41 = vadd.f32 %v5012_v57, %v2257_v24  ;;  %v4619_v24 = vld [vmem:[#allocation11 + $0x128] sm:$0xff] }
 0x187   :  { %2551 = vmatpush.bf16.msra.mxu1 %v4034_v19  ;;  %v2309_v17 = vadd.f32 %v5020_v26, %v2296_v16 }
 0x188   :  { %2898 = vmatpush.bf16.msra.mxu2 %v4584_v20  ;;  %v2283_v4 = vadd.f32 %v5010_v45, %v2270_v41  ;;  %v4611_v45 = vld [vmem:[#allocation11 + $0xe8] sm:$0xff]  ;;  %v4609_v20 = vld [vmem:[#allocation11 + $0xd8] sm:$0xff]  ;;  %v4618_v41 = vld [vmem:[#allocation11 + $0x120] sm:$0xff] }
 0x189   :  { %2527 = vmatpush.bf16.msrb.mxu3 %v3674_v53  ;;  %2540 = vmatpush.bf16.msra.mxu0 %v3834_v29  ;;  %v4607_v29 = vld [vmem:[#allocation11 + $0xc8] sm:$0xff] }
 0x18a   :  { %v2560_v35 = vmax.f32 %v2283_v4, 0.0  ;;  %v4615_v4 = vld [vmem:[#allocation11 + $0x108] sm:$0xff] }
 0x18b   :  { %2552 = vmatpush.bf16.msra.mxu1 %v4014_v31  ;;  %v2334_v52 = vpop.f32.mrf.mxu0  ;;  %v4606_v31 = vld [vmem:[#allocation11 + $0xc0] sm:$0xff] }
 0x18c   :  { %2899 = vmatpush.bf16.msra.mxu2 %v4583_v33  ;;  %2528 = vmatmul.bf16.vlgmr.msrb.gmra.mxu3 %v4953_v44  ;;  %v4594_v44 = vld [vmem:[#allocation11 + $0x60] sm:$0xff]  ;;  %v2565_v15 = vpack.c.bf16 %v2560_v35, %v2560_v35 }
 0x18d   :  { %2906 = vmatpush.bf16.msra.mxu3 %v4597_v43  ;;  %2919 = vmatpush.bf16.msrb.mxu0 %v4605_v32 }
 0x18e   :  { %2541 = vmatmul.bf16.vlgmr.msra.gmra.mxu0 %v4955_v50  ;;  %v4593_v50 = vld [vmem:[#allocation11 + $0x58] sm:$0xff] }
 0x18f   :  { %2553 = vmatpush.bf16.msra.mxu1 %v3994_v40  ;;  %v2321_v59 = vpop.f32.mrf.mxu3 }
 0x190   :  { %2900 = vmatpush.bf16.msra.mxu2 %v4582_v2  ;;  %v2322_v19 = vadd.f32 %v2321_v59, %v2309_v17  ;;  %v4617_v59 = vld [vmem:[#allocation11 + $0x118] sm:$0xff] }
 0x191   :  { %2907 = vmatpush.bf16.msra.mxu3 %v4596_v37  ;;  %2920 = vmatpush.bf16.msrb.mxu0 %v4604_v42 }
 0x192   :  { %2554 = vmatmul.bf16.vlgmr.msra.gmra.mxu1 %v4959_v9  ;;  %v2347_v9 = vpop.f32.mrf.mxu1  ;;  %v2335_v12 = vadd.f32 %v2334_v52, %v2322_v19 }
 0x193   :  { %2901 = vmatmul.bf16.vlgmr.msra.gmra.mxu2 %v2564_v25  ;;  %v2336_v61 = vpop.f32.mrf.mxu0  ;;  %2932 = vmatpush.bf16.msrb.mxu1 %v4613_v3  ;;  %v4621_v25 = vld [vmem:[#allocation11 + $0x138] sm:$0xff]  ;;  %v4614_v3 = vld [vmem:[#allocation11 + $0x100] sm:$0xff] }
 0x194   :  { %v2348_v22 = vadd.f32 %v2347_v9, %v2335_v12  ;;  %2945 = vmatpush.bf16.msrb.mxu2 %v4621_v25 }
 0x195   :  { %2908 = vmatpush.bf16.msra.mxu3 %v4595_v56  ;;  %2921 = vmatpush.bf16.msrb.mxu0 %v4603_v48 }
 0x196   :  { %v2360_v5 = vpop.f32.mrf.mxu2 }
 0x197   :  { %v2323_v57 = vpop.f32.mrf.mxu3  ;;  %2933 = vmatpush.bf16.msrb.mxu1 %v4612_v14  ;;  %v2361_v53 = vadd.f32 %v2360_v5, %v2348_v22 }
 0x199   :  { %2909 = vmatpush.bf16.msra.mxu3 %v4594_v44  ;;  %2922 = vmatpush.bf16.msrb.mxu0 %v4602_v51  ;;  %v4620_v44 = vld [vmem:[#allocation11 + $0x130] sm:$0xff] }
 0x19a   :  { %v2349_v10 = vpop.f32.mrf.mxu1  ;;  %2946 = vmatpush.bf16.msrb.mxu2 %v4620_v44 }
 0x19b   :  { %2934 = vmatpush.bf16.msrb.mxu1 %v4611_v45 }
 0x19d   :  { %2910 = vmatpush.bf16.msra.mxu3 %v4593_v50  ;;  %2923 = vmatpush.bf16.msrb.mxu0 %v4601_v54 }
 0x19e   :  { %v2362_v18 = vpop.f32.mrf.mxu2  ;;  %2947 = vmatpush.bf16.msrb.mxu2 %v4619_v24 }
 0x19f   :  { %2935 = vmatpush.bf16.msrb.mxu1 %v4610_v62 }
 0x1a1   :  { %2911 = vmatpush.bf16.msra.mxu3 %v4592_v55  ;;  %2924 = vmatpush.bf16.msrb.mxu0 %v4600_v60  ;;  %v4616_v60 = vld [vmem:[#allocation11 + $0x110] sm:$0xff] }
 0x1a2   :  { %2948 = vmatpush.bf16.msrb.mxu2 %v4618_v41 }
 0x1a3   :  { %2936 = vmatpush.bf16.msrb.mxu1 %v4609_v20 }
 0x1a5   :  { %2912 = vmatpush.bf16.msra.mxu3 %v4591_v0  ;;  %2925 = vmatpush.bf16.msrb.mxu0 %v4599_v1 }
 0x1a6   :  { %2949 = vmatpush.bf16.msrb.mxu2 %v4617_v59 }
 0x1a7   :  { %2937 = vmatpush.bf16.msrb.mxu1 %v4608_v38 }
 0x1a9   :  { %2913 = vmatpush.bf16.msra.mxu3 %v4590_v6  ;;  %2926 = vmatpush.bf16.msrb.mxu0 %v4598_v11 }
 0x1aa   :  { %2950 = vmatpush.bf16.msrb.mxu2 %v4616_v60 }
 0x1ab   :  { %v2386_v23 = vpop.f32.mrf.mxu0  ;;  %2938 = vmatpush.bf16.msrb.mxu1 %v4607_v29 }
 0x1ac   :  { %2914 = vmatmul.bf16.vlgmr.msra.gmra.mxu3 %v2565_v15  ;;  %v2387_v37 = vadd.f32 %v2386_v23, %v641_v30 }
 0x1ae   :  { %2951 = vmatpush.bf16.msrb.mxu2 %v4615_v4 }
 0x1af   :  { %v2373_v27 = vpop.f32.mrf.mxu3  ;;  %v2399_v58 = vpop.f32.mrf.mxu1  ;;  %2939 = vmatpush.bf16.msrb.mxu1 %v4606_v31 }
 0x1b0   :  { %v2374_v28 = vadd.f32 %v2373_v27, %v2361_v53  ;;  %v2400_v40 = vadd.f32 %v2399_v58, %v2387_v37 }
 0x1b2   :  { %v2561_v43 = vmax.f32 %v2374_v28, 0.0  ;;  %2952 = vmatpush.bf16.msrb.mxu2 %v4614_v3 }
 0x1b3   :  { %v2388_v26 = vpop.f32.mrf.mxu0 }
 0x1b4   :  { %v2566_v13 = vpack.c.bf16 %v2561_v43, %v2561_v43 }
 0x1b6   :  { %v2412_v32 = vpop.f32.mrf.mxu2  ;;  %2927 = vmatmul.bf16.vlgmr.msrb.gmra.mxu0 %v2566_v13 }
 0x1b7   :  { %v2375_v33 = vpop.f32.mrf.mxu3  ;;  %v2401_v34 = vpop.f32.mrf.mxu1  ;;  %v2413_v42 = vadd.f32 %v2412_v32, %v2400_v40 }
 0x1be   :  { %v2414_v36 = vpop.f32.mrf.mxu2 }
 0x1cb   :  { %v2438_v39 = vpop.f32.mrf.mxu0 }
 0x1cf   :  { %v2425_v2 = vpop.f32.mrf.mxu3  ;;  %v2451_v46 = vpop.f32.mrf.mxu1 }
 0x1d0   :  { %v2426_v47 = vadd.f32 %v2425_v2, %v2413_v42 }
 0x1d2   :  { %v2439_v8 = vadd.f32 %v2438_v39, %v2426_v47 }
 0x1d3   :  { %v2440_v56 = vpop.f32.mrf.mxu0 }
 0x1d4   :  { %v2452_v48 = vadd.f32 %v2451_v46, %v2439_v8 }
 0x1d6   :  { %v2464_v49 = vpop.f32.mrf.mxu2 }
 0x1d7   :  { %v2465_v51 = vadd.f32 %v2464_v49, %v2452_v48  ;;  %v2427_v63 = vpop.f32.mrf.mxu3  ;;  %v2453_v52 = vpop.f32.mrf.mxu1 }
 0x1d9   :  { %v2562_v50 = vmax.f32 %v2465_v51, 0.0 }
 0x1db   :  { %v2567_v54 = vpack.c.bf16 %v2562_v50, %v2562_v50 }
 0x1dd   :  { %2940 = vmatmul.bf16.vlgmr.msrb.gmra.mxu1 %v2567_v54 }
 0x1de   :  { %v2466_v55 = vpop.f32.mrf.mxu2 }
 0x1eb   :  { %v2490_v9 = vpop.f32.mrf.mxu0 }
 0x1ef   :  { %v2477_v61 = vpop.f32.mrf.mxu3  ;;  %v2503_v0 = vpop.f32.mrf.mxu1 }
 0x1f0   :  { %v2478_v10 = vadd.f32 %v2477_v61, %v642_v7 }
 0x1f2   :  { %v2491_v11 = vadd.f32 %v2490_v9, %v2478_v10 }
 0x1f3   :  { %v2492_v1 = vpop.f32.mrf.mxu0 }
 0x1f4   :  { %v2504_v14 = vadd.f32 %v2503_v0, %v2491_v11 }
 0x1f6   :  { %v2516_v5 = vpop.f32.mrf.mxu2 }
 0x1f7   :  { %v2479_v6 = vpop.f32.mrf.mxu3  ;;  %v2505_v35 = vpop.f32.mrf.mxu1  ;;  %v2517_v16 = vadd.f32 %v2516_v5, %v2504_v14 }
 0x1fe   :  { %v2518_v57 = vpop.f32.mrf.mxu2 }
 0x20b   :  { %v2542_v15 = vpop.f32.mrf.mxu0 }
 0x20f   :  { %v2529_v45 = vpop.f32.mrf.mxu3  ;;  %v2555_v17 = vpop.f32.mrf.mxu1 }
 0x210   :  { %v2530_v18 = vadd.f32 %v2529_v45, %v2517_v16 }
 0x212   :  { %v2543_v19 = vadd.f32 %v2542_v15, %v2530_v18 }
 0x213   :  { %v2544_v62 = vpop.f32.mrf.mxu0 }
 0x214   :  { %v2556_v12 = vadd.f32 %v2555_v17, %v2543_v19 }
 0x216   :  { %v2563_v20 = vmax.f32 %v2556_v12, 0.0  ;;  %v2902_v22 = vpop.f32.mrf.mxu2 }
 0x217   :  { %v2531_v23 = vpop.f32.mrf.mxu3  ;;  %v2557_v38 = vpop.f32.mrf.mxu1  ;;  %v2903_v58 = vadd.f32 %v4636_v21, %v2902_v22 }
 0x218   :  { %v2568_v53 = vpack.c.bf16 %v2563_v20, %v2563_v20 }
 0x21a   :  { %2953 = vmatmul.bf16.vlgmr.msrb.gmra.mxu2 %v2568_v53 }
 0x21e   :  { %v2904_v27 = vpop.f32.mrf.mxu2 }
 0x22f   :  { %v2915_v28 = vpop.f32.mrf.mxu3 }
 0x230   :  { %v2916_v29 = vadd.f32 %v2915_v28, %v2903_v58 }
 0x233   :  { %v2928_v26 = vpop.f32.mrf.mxu0 }
 0x234   :  { %v2929_v13 = vadd.f32 %v2928_v26, %v2916_v29 }
 0x237   :  { %v2917_v43 = vpop.f32.mrf.mxu3 }
 0x23b   :  { %v2930_v31 = vpop.f32.mrf.mxu0 }
 0x25a   :  { %v2941_v32 = vpop.f32.mrf.mxu1 }
 0x25b   :  { %v2942_v34 = vadd.f32 %v2941_v32, %v2929_v13 }
 0x262   :  { %v2943_v33 = vpop.f32.mrf.mxu1 }
 0x29d   :  { %v2954_v36 = vpop.f32.mrf.mxu2 }
 0x29e   :  { %v2955_v30 = vadd.f32 %v2954_v36, %v2942_v34 }
 0x2a0   :  { %4637 = vtanh.f32 %v2955_v30 }
 0x2a5   :  { %v2956_v37 = vpop.f32.mrf.mxu2 }
 0x2a6   :  { %v4638_v39 = vpop.eup %4637 }
 0x2a7   :  { %2959 = vst [vmem:[#allocation14] sm:$0x3] %v4638_v39 }
 0x2a8   :  { %2970 = dma.vmem_to_hbm [thread:$0]  %s2966_s6, 32, %s2968_s15, [#allocation4]  }
 0x2a9   :  { %4839 = dma.done.wait [#allocation4], 32  }
 0x2aa   :  { %4840 = vsyncadd [#allocation4], 4294967264 }
 0x2ab   :  { %2975 = vsyncpa [#allocation3], 1 }
 0x2ac   :  { %2976 = vsyncpa [#allocation6], 1 }
 0x2ad   :  { %2977 = vsyncpa [#allocation9], 1 }
 0x2ae   :  { %2978 = vsyncpa [#allocation12], 1 }
 0x2af   :  { %2979 = vsyncpa [#allocation4], 1 }

</bundles_post_ra>
